<compile_context>
chip_gen: v7x
topology: tpu7x:2x2x1
jax: 0.10.0
libtpu: 0.0.40
codegen_flags: <defaults>
</compile_context>

<pallas_src>
import functools

import numpy as np
import jax
import jax.numpy as jnp
from jax.experimental import pallas as pl
from jax.experimental.pallas import tpu as pltpu


def _round_up(x, m):
    return ((x + m - 1) // m) * m


# --------------------------------------------------------------------------
# Kernel 1: fused linear layer + per-head attention projections
# --------------------------------------------------------------------------
def _linear_kernel(x_ref, w_ref, b_ref, v_ref, hh_ref, f1_ref, f2_ref,
                   *, n_heads, c_out_h, mxu_dtype):
    """x_ref: (TM, c_in)   w_ref: (c_in, H*c)   b_ref: (1, H*c)   v_ref: (H, 2, c)
    hh_ref: (H, TM, c)     f1_ref/f2_ref: (H, TM, 1)"""
    x = x_ref[...].astype(mxu_dtype)
    w = w_ref[...].astype(mxu_dtype)
    # One lane-dense MXU matmul covering every head at once.
    h_all = jnp.dot(x, w, preferred_element_type=jnp.float32) + b_ref[...]
    for h in range(n_heads):
        lo = h * c_out_h
        hh = h_all[:, lo:lo + c_out_h]                  # (TM, c), f32
        hh_ref[h] = hh.astype(hh_ref.dtype)
        vh = v_ref[h]                                   # (2, c)
        f1_ref[h] = jnp.sum(hh * vh[0:1, :], axis=1, keepdims=True)
        f2_ref[h] = jnp.sum(hh * vh[1:2, :], axis=1, keepdims=True)


# --------------------------------------------------------------------------
# Kernel 2: tiled masked-softmax attention (online / flash-style)
# --------------------------------------------------------------------------
def _attn_kernel(adj_ref, f1_ref, f2_ref, hh_ref, out_ref,
                 m_ref, l_ref, acc_ref,
                 *, n_heads, c_out_h, inv_temp, concat, mxu_dtype, approx_recip):
    """adj_ref: (TM, TN)   f1_ref: (H, TM, 1)   f2_ref: (H, 1, TN)
    hh_ref: (H, TN, c)     out_ref: (TM, H*c) or (TM, c)
    scratch: m_ref/l_ref (H, TM, 1) f32, acc_ref (H, TM, c) f32"""
    j = pl.program_id(1)
    neg_big = jnp.float32(-1e30)

    @pl.when(j == 0)
    def _init():
        m_ref[...] = jnp.full_like(m_ref, neg_big)
        l_ref[...] = jnp.zeros_like(l_ref)
        acc_ref[...] = jnp.zeros_like(acc_ref)

    # Adjacency tile is loaded once per (row, col) step and shared by every
    # head; it only gates/scales logits (never feeds the MXU) so int8 is fine.
    adj = adj_ref[...].astype(jnp.float32)

    for h in range(n_heads):
        f1 = f1_ref[h]                                  # (TM, 1)
        f2 = f2_ref[h]                                  # (1, TN), pre-transposed
        logits = adj * (f1 + f2)                        # (TM, TN)
        u = 1.0 / (1.0 + jnp.exp(-logits)) - 0.5        # sigmoid(L) - 0.5, f32
        mask = u != 0.0                                 # to_sparse(): exact nonzeros
        s = jnp.where(mask, u * inv_temp, neg_big)

        m_prev = m_ref[h]                               # (TM, 1)
        m_new = jnp.maximum(m_prev, jnp.max(s, axis=1, keepdims=True))
        alpha = jnp.exp(m_prev - m_new)
        p = jnp.where(mask, jnp.exp(s - m_new), 0.0)

        l_ref[h] = alpha * l_ref[h] + jnp.sum(p, axis=1, keepdims=True)
        acc_ref[h] = alpha * acc_ref[h] + jnp.dot(
            p.astype(mxu_dtype), hh_ref[h].astype(mxu_dtype),
            preferred_element_type=jnp.float32)
        m_ref[h] = m_new

    @pl.when(j == pl.num_programs(1) - 1)
    def _finalize():
        cols = []
        for h in range(n_heads):
            l = l_ref[h]
            safe_l = jnp.where(l > 0.0, l, 1.0)
            if approx_recip:
                inv = pl.reciprocal(safe_l, approx=True)
            else:
                inv = 1.0 / safe_l
            inv = jnp.where(l > 0.0, inv, 0.0)          # fully-masked rows -> 0
            cols.append(acc_ref[h] * inv)
        if concat:
            out = jnp.concatenate(cols, axis=1)         # torch.cat(res, dim=1)
        else:
            out = cols[0]
            for extra in cols[1:]:
                out = out + extra
            out = out * (1.0 / n_heads)                 # mean over heads
        out_ref[...] = out.astype(out_ref.dtype)        # single lane-dense store


# --------------------------------------------------------------------------
# Wrapper
# --------------------------------------------------------------------------
def gat_multi_head(node_feats, adj_matrix, W, b, v, *, temp=1.0,
                   concat_heads=True, block_nodes=128, use_bf16=False,
                   out_dtype=jnp.float32):
    """node_feats: (N, c_in); adj_matrix: (N, N) (any dtype; int8/bool saves HBM);
    W: (H, c_in, c_out_h); b: (H, 1, c_out_h); v: (H, 2, c_out_h) (row0=v0, row1=v1).
    block_nodes: row/col tile (multiple of 128); sweep 256-1024 for large graphs
    (size separately for v7x's 64 MiB VMEM)."""
    n_heads, c_in, c_out_h = W.shape
    N = node_feats.shape[0]
    assert adj_matrix.shape == (N, N)
    assert b.shape == (n_heads, 1, c_out_h) and v.shape == (n_heads, 2, c_out_h)
    assert block_nodes % 128 == 0

    mxu_dtype = jnp.bfloat16 if use_bf16 else jnp.float32
    hh_dtype = jnp.bfloat16 if use_bf16 else jnp.float32

    # Pad the node axis to a tile multiple; padded adjacency entries are zero so
    # the exact-zero sparse-softmax mask drops them; padded rows sliced off below.
    tile = block_nodes
    n_pad = _round_up(N, tile)
    x = node_feats.astype(jnp.float32)
    adj = adj_matrix
    if n_pad != N:
        x = jnp.pad(x, ((0, n_pad - N), (0, 0)))
        adj = jnp.pad(adj, ((0, n_pad - N), (0, n_pad - N)))

    # Stack every head's weights side-by-side so the linear layer is a single
    # lane-dense matmul (columns [h*c : (h+1)*c] belong to head h).
    hc = n_heads * c_out_h
    w_all = jnp.transpose(W, (1, 0, 2)).reshape(c_in, hc).astype(jnp.float32)
    b_all = b.reshape(1, hc).astype(jnp.float32)

    n_row = n_pad // tile
    n_col = n_pad // tile

    hh, f1, f2col = pl.pallas_call(
        functools.partial(_linear_kernel, n_heads=n_heads, c_out_h=c_out_h,
                          mxu_dtype=mxu_dtype),
        out_shape=(
            jax.ShapeDtypeStruct((n_heads, n_pad, c_out_h), hh_dtype),
            jax.ShapeDtypeStruct((n_heads, n_pad, 1), jnp.float32),
            jax.ShapeDtypeStruct((n_heads, n_pad, 1), jnp.float32),
        ),
        grid_spec=pltpu.PrefetchScalarGridSpec(
            num_scalar_prefetch=0,
            grid=(n_row,),
            in_specs=[
                pl.BlockSpec((tile, c_in), lambda i: (i, 0)),
                pl.BlockSpec((c_in, hc), lambda i: (0, 0)),
                pl.BlockSpec((1, hc), lambda i: (0, 0)),
                pl.BlockSpec((n_heads, 2, c_out_h), lambda i: (0, 0, 0)),
            ],
            out_specs=(
                pl.BlockSpec((n_heads, tile, c_out_h), lambda i: (0, i, 0)),
                pl.BlockSpec((n_heads, tile, 1), lambda i: (0, i, 0)),
                pl.BlockSpec((n_heads, tile, 1), lambda i: (0, i, 0)),
            ),
        ),
        compiler_params=pltpu.CompilerParams(dimension_semantics=("parallel",)),
    )(x, w_all, b_all, v.astype(jnp.float32))

    # Column-side f2 staged as (H, 1, N) so the attention inner loop never
    # transposes.  TODO(synk): emit this layout directly from _linear_kernel.
    f2row = jnp.transpose(f2col, (0, 2, 1))

    out_w = hc if concat_heads else c_out_h

    adj_bytes = int(np.dtype(adj.dtype).itemsize)
    hh_bytes = int(np.dtype(hh_dtype).itemsize)
    out_bytes = int(np.dtype(out_dtype).itemsize)
    vmem_need = (
        2 * tile * tile * adj_bytes                    # adj tiles (double-buffered)
        + 2 * n_heads * tile * c_out_h * hh_bytes      # value tiles
        + 4 * n_heads * tile * 4                       # f1 + f2 tiles
        + 2 * tile * out_w * out_bytes                 # output slab
        + n_heads * tile * (c_out_h + 2) * 4           # m/l/acc scratch
    )
    vmem_limit = int(min(max(vmem_need + (8 << 20), 32 << 20), 96 << 20))

    cost = pl.CostEstimate(
        flops=int(2 * n_heads * n_pad * n_pad * c_out_h
                  + 12 * n_heads * n_pad * n_pad),
        transcendentals=int(2 * n_heads * n_pad * n_pad),
        bytes_accessed=int(n_pad * n_pad * adj_bytes
                           + n_heads * n_pad * c_out_h * hh_bytes
                           + n_pad * out_w * out_bytes),
    )

    out_pad = pl.pallas_call(
        functools.partial(_attn_kernel, n_heads=n_heads, c_out_h=c_out_h,
                          inv_temp=float(1.0 / temp), concat=concat_heads,
                          mxu_dtype=mxu_dtype, approx_recip=use_bf16),
        out_shape=jax.ShapeDtypeStruct((n_pad, out_w), out_dtype),
        grid_spec=pltpu.PrefetchScalarGridSpec(
            num_scalar_prefetch=0,
            grid=(n_row, n_col),
            in_specs=[
                pl.BlockSpec((tile, tile), lambda i, j: (i, j)),               # adj
                pl.BlockSpec((n_heads, tile, 1), lambda i, j: (0, i, 0)),      # f1
                pl.BlockSpec((n_heads, 1, tile), lambda i, j: (0, 0, j)),      # f2
                pl.BlockSpec((n_heads, tile, c_out_h), lambda i, j: (0, j, 0)),  # h
            ],
            out_specs=pl.BlockSpec((tile, out_w), lambda i, j: (i, 0)),
            scratch_shapes=[
                pltpu.VMEM((n_heads, tile, 1), jnp.float32),         # m
                pltpu.VMEM((n_heads, tile, 1), jnp.float32),         # l
                pltpu.VMEM((n_heads, tile, c_out_h), jnp.float32),   # acc
            ],
        ),
        compiler_params=pltpu.CompilerParams(
            dimension_semantics=("parallel", "arbitrary"),
            vmem_limit_bytes=vmem_limit),
        cost_estimate=cost,
    )(adj, f1, f2row, hh)

    return out_pad[:N]


# --------------------------------------------------------------------------
# Reference + demo
# --------------------------------------------------------------------------
def _init_params(key, c_in, c_out_total, n_heads, concat_heads=True):
    """Mirror GATSingleHead.__init__ shapes / init ranges (stacked over heads)."""
    if concat_heads:
        assert c_out_total % n_heads == 0
        c_out_h = c_out_total // n_heads
    else:
        c_out_h = c_out_total
    k_w, k_v0, k_v1 = jax.random.split(key, 3)
    lim_w = float(np.sqrt(6.0 / (c_in + c_out_h)))
    lim_v = float(np.sqrt(6.0 / (c_out_h + 1)))
    W = jax.random.uniform(k_w, (n_heads, c_in, c_out_h), jnp.float32, -lim_w, lim_w)
    b = jnp.zeros((n_heads, 1, c_out_h), jnp.float32)
    v0 = jax.random.uniform(k_v0, (n_heads, 1, c_out_h), jnp.float32, -lim_v, lim_v)
    v1 = jax.random.uniform(k_v1, (n_heads, 1, c_out_h), jnp.float32, -lim_v, lim_v)
    v = jnp.concatenate([v0, v1], axis=1)               # (H, 2, c_out_h)
    return W, b, v


def _reference(node_feats, adj, W, b, v, temp=1.0, concat_heads=True):
    """Pure-JAX mirror of the PyTorch forward (dense sparse-softmax emulation)."""
    adj = adj.astype(jnp.float32)
    outs = []
    for h in range(W.shape[0]):
        hf = jnp.dot(node_feats, W[h], precision="highest") + b[h]
        f1 = jnp.dot(hf, v[h, 0][:, None], precision="highest")
        f2 = jnp.dot(hf, v[h, 1][:, None], precision="highest")
        logits = adj * (f1 + f2.T)
        u = jax.nn.sigmoid(logits) - 0.5
        mask = u != 0.0
        sm = jnp.where(mask, u / temp, -jnp.inf)
        row_max = jnp.max(sm, axis=1, keepdims=True)
        row_max = jnp.where(jnp.isfinite(row_max), row_max, 0.0)
        p = jnp.where(mask, jnp.exp(sm - row_max), 0.0)
        den = jnp.sum(p, axis=1, keepdims=True)
        attn = jnp.where(den > 0.0, p / jnp.where(den > 0.0, den, 1.0), 0.0)
        outs.append(jnp.dot(attn, hf, precision="highest"))
    if concat_heads:
        return jnp.concatenate(outs, axis=1)
    return jnp.mean(jnp.stack(outs, axis=0), axis=0)


if __name__ == "__main__":
    key = jax.random.PRNGKey(0)
    k_x, k_adj, k_p1, k_p2 = jax.random.split(key, 4)

    # Small GAT-sized problem: 256 nodes, 16-d input, 32-d output, 2 heads.
    N, c_in, c_out, n_heads = 256, 16, 32, 2
    node_feats = jax.random.normal(k_x, (N, c_in), jnp.float32)
    adj_f32 = (jax.random.uniform(k_adj, (N, N), jnp.float32) < 0.1).astype(jnp.float32)
    adj_f32 = jnp.maximum(adj_f32, jnp.eye(N, dtype=jnp.float32))   # self loops
    adj_i8 = adj_f32.astype(jnp.int8)   # compact HBM form consumed by the kernel

    # concat_heads=True, f32 MXU path (strict check vs. pure-JAX reference).
    W, b, v = _init_params(k_p1, c_in, c_out, n_heads, concat_heads=True)
    out = jax.block_until_ready(
        gat_multi_head(node_feats, adj_i8, W, b, v, temp=1.0,
                       concat_heads=True, use_bf16=False))
    ref = _reference(node_feats, adj_f32, W, b, v, temp=1.0, concat_heads=True)
    np.testing.assert_allclose(np.asarray(out), np.asarray(ref),
                               rtol=2e-2, atol=1e-3)

    # concat_heads=True, bf16 MXU operands (v6e/v7x fast path, loose check).
    out_bf16 = jax.block_until_ready(
        gat_multi_head(node_feats, adj_i8, W, b, v, temp=1.0,
                       concat_heads=True, use_bf16=True))
    np.testing.assert_allclose(np.asarray(out_bf16), np.asarray(ref),
                               rtol=1e-1, atol=5e-2)

    # concat_heads=False (mean over heads), f32 path.
    W2, b2, v2 = _init_params(k_p2, c_in, c_out, n_heads, concat_heads=False)
    out_mean = jax.block_until_ready(
        gat_multi_head(node_feats, adj_i8, W2, b2, v2, temp=1.0,
                       concat_heads=False, use_bf16=False))
    ref_mean = _reference(node_feats, adj_f32, W2, b2, v2, temp=1.0,
                          concat_heads=False)
    np.testing.assert_allclose(np.asarray(out_mean), np.asarray(ref_mean),
                               rtol=2e-2, atol=1e-3)

    print("KERNEL_OK")
</pallas_src>

<mosaic_0001>
module attributes {stable_mosaic.version = 11 : i64} {
  func.func @_linear_kernel(%arg0: i32, %arg1: memref<128x16xf32, #tpu.memory_space<vmem>>, %arg2: memref<16x32xf32, #tpu.memory_space<vmem>>, %arg3: memref<1x32xf32, #tpu.memory_space<vmem>>, %arg4: memref<2x2x16xf32, #tpu.memory_space<vmem>>, %arg5: memref<2x128x16xf32, #tpu.memory_space<vmem>>, %arg6: memref<2x128x1xf32, #tpu.memory_space<vmem>>, %arg7: memref<2x128x1xf32, #tpu.memory_space<vmem>>) attributes {dimension_semantics = [#tpu.dimension_semantics<parallel>], iteration_bounds = array<i64: 2>, scalar_prefetch = 0 : i64, scratch_operands = 0 : i64, tpu.core_type = #tpu.core_type<tc>, window_params = [{transform_indices = @transform_0, window_bounds = array<i64: 128, 16>}, {pipeline_mode = #tpu.pipeline_mode<synchronous>, transform_indices = @transform_1, window_bounds = array<i64: 16, 32>}, {pipeline_mode = #tpu.pipeline_mode<synchronous>, transform_indices = @transform_2, window_bounds = array<i64: 1, 32>}, {pipeline_mode = #tpu.pipeline_mode<synchronous>, transform_indices = @transform_3, window_bounds = array<i64: 2, 2, 16>}, {transform_indices = @transform_4, window_bounds = array<i64: 2, 128, 16>}, {transform_indices = @transform_5, window_bounds = array<i64: 2, 128, 1>}, {transform_indices = @transform_6, window_bounds = array<i64: 2, 128, 1>}]} {
    %c0 = arith.constant 0 : index
    %c0_0 = arith.constant 0 : index
    %0 = vector.load %arg1[%c0, %c0_0] : memref<128x16xf32, #tpu.memory_space<vmem>>, vector<128x16xf32>
    %c0_1 = arith.constant 0 : index
    %c0_2 = arith.constant 0 : index
    %1 = vector.load %arg2[%c0_1, %c0_2] : memref<16x32xf32, #tpu.memory_space<vmem>>, vector<16x32xf32>
    %cst = arith.constant dense<0.000000e+00> : vector<128x32xf32>
    %2 = tpu.matmul %0, %1, %cst {dimension_numbers = #tpu.dot_dimension_numbers<[1], [0], [0], [1], [0, 0, 1, 1], [], []>} : vector<128x16xf32>, vector<16x32xf32>, vector<128x32xf32> -> vector<128x32xf32>
    %c0_3 = arith.constant 0 : index
    %c0_4 = arith.constant 0 : index
    %3 = vector.load %arg3[%c0_3, %c0_4] : memref<1x32xf32, #tpu.memory_space<vmem>>, vector<1x32xf32>
    %4 = vector.broadcast %3 : vector<1x32xf32> to vector<128x32xf32>
    %5 = arith.addf %2, %4 : vector<128x32xf32>
    %6 = vector.extract_strided_slice %5 {offsets = [0, 0], sizes = [128, 16], strides = [1, 1]} : vector<128x32xf32> to vector<128x16xf32>
    %c0_5 = arith.constant 0 : index
    %c0_6 = arith.constant 0 : index
    %c0_7 = arith.constant 0 : index
    %7 = vector.load %arg5[%c0_5, %c0_6, %c0_7] : memref<2x128x16xf32, #tpu.memory_space<vmem>>, vector<1x128x16xf32>
    %8 = vector.shape_cast %7 : vector<1x128x16xf32> to vector<128x16xf32>
    %9 = vector.shape_cast %6 : vector<128x16xf32> to vector<1x128x16xf32>
    tpu.vector_store %arg5[%c0_5, %c0_6, %c0_7], %9 {strides = array<i32>} : memref<2x128x16xf32, #tpu.memory_space<vmem>>, vector<1x128x16xf32>,
    %c0_8 = arith.constant 0 : index
    %c0_9 = arith.constant 0 : index
    %c0_10 = arith.constant 0 : index
    %10 = vector.load %arg4[%c0_8, %c0_9, %c0_10] : memref<2x2x16xf32, #tpu.memory_space<vmem>>, vector<1x2x16xf32>
    %11 = vector.shape_cast %10 : vector<1x2x16xf32> to vector<2x16xf32>
    %12 = vector.extract_strided_slice %11 {offsets = [0, 0], sizes = [1, 16], strides = [1, 1]} : vector<2x16xf32> to vector<1x16xf32>
    %13 = vector.broadcast %12 : vector<1x16xf32> to vector<128x16xf32>
    %14 = arith.mulf %6, %13 : vector<128x16xf32>
    %cst_11 = arith.constant dense<0.000000e+00> : vector<128xf32>
    %15 = vector.multi_reduction <add>, %14, %cst_11 [1] : vector<128x16xf32> to vector<128xf32>
    %16 = vector.shape_cast %15 : vector<128xf32> to vector<128x1xf32>
    %c0_12 = arith.constant 0 : index
    %c0_13 = arith.constant 0 : index
    %c0_14 = arith.constant 0 : index
    %17 = vector.load %arg6[%c0_12, %c0_13, %c0_14] : memref<2x128x1xf32, #tpu.memory_space<vmem>>, vector<1x128x1xf32>
    %18 = vector.shape_cast %17 : vector<1x128x1xf32> to vector<128x1xf32>
    %19 = vector.shape_cast %16 : vector<128x1xf32> to vector<1x128x1xf32>
    tpu.vector_store %arg6[%c0_12, %c0_13, %c0_14], %19 {strides = array<i32>} : memref<2x128x1xf32, #tpu.memory_space<vmem>>, vector<1x128x1xf32>,
    %20 = vector.extract_strided_slice %11 {offsets = [1, 0], sizes = [1, 16], strides = [1, 1]} : vector<2x16xf32> to vector<1x16xf32>
    %21 = vector.broadcast %20 : vector<1x16xf32> to vector<128x16xf32>
    %22 = arith.mulf %6, %21 : vector<128x16xf32>
    %cst_15 = arith.constant dense<0.000000e+00> : vector<128xf32>
    %23 = vector.multi_reduction <add>, %22, %cst_15 [1] : vector<128x16xf32> to vector<128xf32>
    %24 = vector.shape_cast %23 : vector<128xf32> to vector<128x1xf32>
    %c0_16 = arith.constant 0 : index
    %c0_17 = arith.constant 0 : index
    %c0_18 = arith.constant 0 : index
    %25 = vector.load %arg7[%c0_16, %c0_17, %c0_18] : memref<2x128x1xf32, #tpu.memory_space<vmem>>, vector<1x128x1xf32>
    %26 = vector.shape_cast %25 : vector<1x128x1xf32> to vector<128x1xf32>
    %27 = vector.shape_cast %24 : vector<128x1xf32> to vector<1x128x1xf32>
    tpu.vector_store %arg7[%c0_16, %c0_17, %c0_18], %27 {strides = array<i32>} : memref<2x128x1xf32, #tpu.memory_space<vmem>>, vector<1x128x1xf32>,
    %28 = vector.extract_strided_slice %5 {offsets = [0, 16], sizes = [128, 16], strides = [1, 1]} : vector<128x32xf32> to vector<128x16xf32>
    %c1 = arith.constant 1 : index
    %c0_19 = arith.constant 0 : index
    %c0_20 = arith.constant 0 : index
    %29 = vector.load %arg5[%c1, %c0_19, %c0_20] : memref<2x128x16xf32, #tpu.memory_space<vmem>>, vector<1x128x16xf32>
    %30 = vector.shape_cast %29 : vector<1x128x16xf32> to vector<128x16xf32>
    %31 = vector.shape_cast %28 : vector<128x16xf32> to vector<1x128x16xf32>
    tpu.vector_store %arg5[%c1, %c0_19, %c0_20], %31 {strides = array<i32>} : memref<2x128x16xf32, #tpu.memory_space<vmem>>, vector<1x128x16xf32>,
    %c1_21 = arith.constant 1 : index
    %c0_22 = arith.constant 0 : index
    %c0_23 = arith.constant 0 : index
    %32 = vector.load %arg4[%c1_21, %c0_22, %c0_23] : memref<2x2x16xf32, #tpu.memory_space<vmem>>, vector<1x2x16xf32>
    %33 = vector.shape_cast %32 : vector<1x2x16xf32> to vector<2x16xf32>
    %34 = vector.extract_strided_slice %33 {offsets = [0, 0], sizes = [1, 16], strides = [1, 1]} : vector<2x16xf32> to vector<1x16xf32>
    %35 = vector.broadcast %34 : vector<1x16xf32> to vector<128x16xf32>
    %36 = arith.mulf %28, %35 : vector<128x16xf32>
    %cst_24 = arith.constant dense<0.000000e+00> : vector<128xf32>
    %37 = vector.multi_reduction <add>, %36, %cst_24 [1] : vector<128x16xf32> to vector<128xf32>
    %38 = vector.shape_cast %37 : vector<128xf32> to vector<128x1xf32>
    %c1_25 = arith.constant 1 : index
    %c0_26 = arith.constant 0 : index
    %c0_27 = arith.constant 0 : index
    %39 = vector.load %arg6[%c1_25, %c0_26, %c0_27] : memref<2x128x1xf32, #tpu.memory_space<vmem>>, vector<1x128x1xf32>
    %40 = vector.shape_cast %39 : vector<1x128x1xf32> to vector<128x1xf32>
    %41 = vector.shape_cast %38 : vector<128x1xf32> to vector<1x128x1xf32>
    tpu.vector_store %arg6[%c1_25, %c0_26, %c0_27], %41 {strides = array<i32>} : memref<2x128x1xf32, #tpu.memory_space<vmem>>, vector<1x128x1xf32>,
    %42 = vector.extract_strided_slice %33 {offsets = [1, 0], sizes = [1, 16], strides = [1, 1]} : vector<2x16xf32> to vector<1x16xf32>
    %43 = vector.broadcast %42 : vector<1x16xf32> to vector<128x16xf32>
    %44 = arith.mulf %28, %43 : vector<128x16xf32>
    %cst_28 = arith.constant dense<0.000000e+00> : vector<128xf32>
    %45 = vector.multi_reduction <add>, %44, %cst_28 [1] : vector<128x16xf32> to vector<128xf32>
    %46 = vector.shape_cast %45 : vector<128xf32> to vector<128x1xf32>
    %c1_29 = arith.constant 1 : index
    %c0_30 = arith.constant 0 : index
    %c0_31 = arith.constant 0 : index
    %47 = vector.load %arg7[%c1_29, %c0_30, %c0_31] : memref<2x128x1xf32, #tpu.memory_space<vmem>>, vector<1x128x1xf32>
    %48 = vector.shape_cast %47 : vector<1x128x1xf32> to vector<128x1xf32>
    %49 = vector.shape_cast %46 : vector<128x1xf32> to vector<1x128x1xf32>
    tpu.vector_store %arg7[%c1_29, %c0_30, %c0_31], %49 {strides = array<i32>} : memref<2x128x1xf32, #tpu.memory_space<vmem>>, vector<1x128x1xf32>,
    return
  }
  func.func @transform_0(%arg0: i32) -> (i32, i32) {
    %c0_i32 = arith.constant 0 : i32
    %c0_i32_0 = arith.constant 0 : i32
    return %arg0, %c0_i32 : i32, i32
  }
  func.func @transform_1(%arg0: i32) -> (i32, i32) {
    %c0_i32 = arith.constant 0 : i32
    %c0_i32_0 = arith.constant 0 : i32
    %c0_i32_1 = arith.constant 0 : i32
    return %c0_i32, %c0_i32_0 : i32, i32
  }
  func.func @transform_2(%arg0: i32) -> (i32, i32) {
    %c0_i32 = arith.constant 0 : i32
    %c0_i32_0 = arith.constant 0 : i32
    %c0_i32_1 = arith.constant 0 : i32
    return %c0_i32, %c0_i32_0 : i32, i32
  }
  func.func @transform_3(%arg0: i32) -> (i32, i32, i32) {
    %c0_i32 = arith.constant 0 : i32
    %c0_i32_0 = arith.constant 0 : i32
    %c0_i32_1 = arith.constant 0 : i32
    %c0_i32_2 = arith.constant 0 : i32
    return %c0_i32, %c0_i32_0, %c0_i32_1 : i32, i32, i32
  }
  func.func @transform_4(%arg0: i32) -> (i32, i32, i32) {
    %c0_i32 = arith.constant 0 : i32
    %c0_i32_0 = arith.constant 0 : i32
    %c0_i32_1 = arith.constant 0 : i32
    return %c0_i32, %arg0, %c0_i32_0 : i32, i32, i32
  }
  func.func @transform_5(%arg0: i32) -> (i32, i32, i32) {
    %c0_i32 = arith.constant 0 : i32
    %c0_i32_0 = arith.constant 0 : i32
    %c0_i32_1 = arith.constant 0 : i32
    return %c0_i32, %arg0, %c0_i32_0 : i32, i32, i32
  }
  func.func @transform_6(%arg0: i32) -> (i32, i32, i32) {
    %c0_i32 = arith.constant 0 : i32
    %c0_i32_0 = arith.constant 0 : i32
    %c0_i32_1 = arith.constant 0 : i32
    return %c0_i32, %arg0, %c0_i32_0 : i32, i32, i32
  }
}

</mosaic_0001>

<bundles_post_ra>
// kernel: tpu_custom_call.1
= control target key start
LH: loop header
LB: loop body
LE: loop exit
PB: predicated region body
PF: predicated region fallthrough
CT: control target
= control target key end

     0   :  { %s1891_s21 = smov 0   ;;  %s1893_s22 = smov 0   ;;  %s2772_s0 = inlined_call_operand.vmem [shape: f32[256,16], index: 0, kind: input, shape index: {}]   ;;  %s2773_s1 = inlined_call_operand.vmem [shape: f32[16,32], index: 1, kind: input, shape index: {}]   ;;  %s2774_s2 = inlined_call_operand.vmem [shape: f32[1,32], index: 2, kind: input, shape index: {}]   ;;  %s2775_s3 = inlined_call_operand.vmem [shape: f32[2,2,16], index: 3, kind: input, shape index: {}]   ;;  %s2776_s4 = inlined_call_operand.vmem [shape: f32[2,256,16], index: 4, kind: output, shape index: {0}]   ;;  %s2777_s5 = inlined_call_operand.vmem [shape: f32[2,256,1], index: 5, kind: output, shape index: {1}]   ;;  %s2778_s6 = inlined_call_operand.vmem [shape: f32[2,256,1], index: 6, kind: output, shape index: {2}]  }
   0x1   :  { %s1895_s23 = smov 0  }
   0x2 LB: > { %s1904_s24 = sadd.s32 4294967295, %s1852_s23   ;;  %s1906_s25 = sadd.s32 1, %s1852_s23   ;;  %s1852_s23 = sphi %s1895_s23, %s2782_s23   ;;  %s1848_s22 = sphi %s1893_s22, %s2781_s22   ;;  %s1844_s21 = sphi %s1891_s21, %s2780_s21  }
   0x3   : > { %s110_s26 = ssub.s32 %s1852_s23, %s1906_s25  ;;  %s113_s27 = sadd.s32 1, %s1848_s22 }
   0x4   : > { %p111_p0 = scmp.eq.s32.totalorder %s110_s26, 0  ;;  %p123_p1 = scmp.ne.s32.totalorder %s1848_s22, %s1844_s21 }
   0x5   : > { %p124_p2 = scmp.eq.s32.totalorder %s1904_s24, 1  ;;  %p1666_p3 = scmp.ge.s32.totalorder %s1852_s23, 1 }
   0x6   : > { %s1914_s28 = scalar_select %p111_p0, %s1848_s22, %s113_s27  }
   0x7   : > { %p1916_p4 = por %p124_p2, %p123_p1  ;;  %p218_p5 = scmp.lt.s32.totalorder %s1852_s23, 3 }
   0x9   : > { %p219_p6 = pnand %p1666_p3, %p218_p5 }
   0xa   : > { %v280_v0 = vld [vmem:[%s2773_s1] sm:$0xff] (!%p219_p6)  ;;  %v281_v1 = vld [vmem:[%s2773_s1 + $0x8] sm:$0xff] (!%p219_p6)  ;;  %s1670_s10 = sshll.u32 (!%p219_p6), %s1904_s24, 4  ;;  %v500_v2 = vlaneseq (!%p219_p6)  ;;  %vm289_vm0 = vcmask (!%p219_p6), 130048   ;;  %s1854_s17 = smov (!%p219_p6), 16   ;;  %vm568_vm1 = vcmask (!%p219_p6), 7168  }
   0xb   : > { %222 = sbr.rel (%p219_p6) target bundleno = 959 (0x3bf), region = 36  ;;  %v1798_v3 = vpack.c.bf16 (!%p219_p6), %v281_v1, %v280_v0  ;;  %p256_p7 = scmp.lt.s32.totalorder (!%p219_p6), %s1670_s10, 31  ;;  %v1705_v6 = vld [vmem:[%s2775_s3 + $0x2] sm:$0x3] (!%p219_p6)  ;;  %v1672_v26 = vld [vmem:[%s2774_s2] ss:$0 sm:$0xff] (!%p219_p6) }
   0xc   : > { %v1927_v4 = vshrl.u32 (!%p219_p6), %v500_v2, 7  ;;  %s240_s18 = sand.u32 (!%p219_p6), 1, %s1844_s21   ;;  %s1855_s26 = smov (!%p219_p6), 112   ;;  %v499_v1 = vld [vmem:[%s2775_s3] sm:$0x3] (!%p219_p6) }
   0xd   : > { %1799 = vmatprep.subr.bf16.mxu0 (!%p219_p6), %v1798_v3  ;;  %1802 = vmatprep.subr.bf16.mxu1 (!%p219_p6), %v1798_v3  ;;  %s1976_s19 = sshll.u32 (!%p219_p6), %s240_s18, 8 }
   0xe   : > { %1801 = vmatpush3.bf16.msra.mxu0 (!%p219_p6), %v1798_v3  ;;  %1803 = vmatpush3.bf16.msra.mxu1 (!%p219_p6), %v1798_v3  ;;  %v587_v5 = vsub.s32 (!%p219_p6), 1, %v1927_v4  ;;  %v502_v7 = vsub.s32 (!%p219_p6), 0, %v1927_v4  ;;  %s1990_s21 = scalar_lea.vmem (!%p219_p6), [#allocation2], %s1976_s19  ;;  %s2195_s7 = scalar_lea.vmem (!%p219_p6), [#allocation3], %s1976_s19 }
   0xf   : > { %s2216_s8 = scalar_lea.vmem (!%p219_p6), [#allocation4], %s1976_s19 }
  0x10   : > { %v908_v11 = vrot.slane (!%p219_p6), %v1705_v6, %v587_v5  ;;  %v755_v15 = vrot.slane (!%p219_p6), %v1705_v6, %v502_v7  ;;  %v2093_v2 = vrot.slane (!%p219_p6), %v499_v1, %v502_v7 }
  0x12   : > { %s2784_s10 = smov (!%p256_p7, %s1670_s10), 31  ;;  %910 = vrot.lane.b32.xlu0 %v908_v11, %s1854_s17  ;;  %757 = vrot.lane.b32.xlu1 %v755_v15, %s1854_s17  ;;  %s1749_s9 = sshll.u32 (%p1916_p4), %s1904_s24, 7 }
  0x13   : > { %s1671_s13 = sshll.u32 %s2784_s10, 3  ;;  %s2555_s12 = scalar_lea.vmem (%p1916_p4), %s2776_s4, %s1749_s9 }
  0x14   : > { %s1937_s16 = scalar_lea.vmem %s2772_s0, %s1671_s13 }
  0x15   : > { %v264_v8 = vld [vmem:[%s1937_s16] sm:$0xff]  ;;  %v265_v10 = vld [vmem:[%s1937_s16 + $0x8] sm:$0xff]  ;;  %v266_v13 = vld [vmem:[%s1937_s16 + $0x10] sm:$0xff] }
  0x16   : > { %v272_v9 = vld [vmem:[%s1937_s16 + $0x40] sm:$0xff]  ;;  %1774 = vmatprep.mubr.msk.f32.mxu0 %vm289_vm0, %v264_v8  ;;  %v273_v12 = vld [vmem:[%s1937_s16 + $0x48] sm:$0xff]  ;;  %v274_v14 = vld [vmem:[%s1937_s16 + $0x50] sm:$0xff]  ;;  %v2100_v8 = vrot.slane %v499_v1, %v587_v5 }
  0x17   : > { %1786 = vmatprep.mubr.msk.f32.mxu1 %vm289_vm0, %v272_v9  ;;  %1775 = vmatmul.mubr.msk.f32.vlgmr.msra.gmra.mrb[0].mxu0 %vm289_vm0, %v265_v10  ;;  %v267_v16 = vld [vmem:[%s1937_s16 + $0x18] sm:$0xff]  ;;  %v268_v18 = vld [vmem:[%s1937_s16 + $0x20] sm:$0xff]  ;;  %v269_v20 = vld [vmem:[%s1937_s16 + $0x28] sm:$0xff] }
  0x18   : > { %1787 = vmatmul.mubr.msk.f32.vlgmr.msra.gmra.mrb[0].mxu1 %vm289_vm0, %v273_v12  ;;  %1777 = vmatprep.mubr.msk.f32.mxu0 %vm289_vm0, %v266_v13  ;;  %v275_v17 = vld [vmem:[%s1937_s16 + $0x58] sm:$0xff]  ;;  %v276_v19 = vld [vmem:[%s1937_s16 + $0x60] sm:$0xff]  ;;  %v277_v21 = vld [vmem:[%s1937_s16 + $0x68] sm:$0xff] }
  0x19   : > { %1789 = vmatprep.mubr.msk.f32.mxu1 %vm289_vm0, %v274_v14  ;;  %v270_v22 = vld [vmem:[%s1937_s16 + $0x30] sm:$0xff]  ;;  %v271_v24 = vld [vmem:[%s1937_s16 + $0x38] sm:$0xff] }
  0x1a   : > { %v278_v23 = vld [vmem:[%s1937_s16 + $0x70] sm:$0xff]  ;;  %v279_v25 = vld [vmem:[%s1937_s16 + $0x78] sm:$0xff] }
  0x1b   : > { %1778 = vmatmul.mubr.msk.f32.gmra.mrb[2].mxu0 %vm289_vm0, %v267_v16 }
  0x1c   : > { %1790 = vmatmul.mubr.msk.f32.gmra.mrb[2].mxu1 %vm289_vm0, %v275_v17  ;;  %1780 = vmatprep.mubr.msk.f32.mxu0 %vm289_vm0, %v268_v18 }
  0x1d   : > { %1792 = vmatprep.mubr.msk.f32.mxu1 %vm289_vm0, %v276_v19 }
  0x1f   : > { %1781 = vmatmul.mubr.msk.f32.gmra.mrb[4].mxu0 %vm289_vm0, %v269_v20 }
  0x20   : > { %1793 = vmatmul.mubr.msk.f32.gmra.mrb[4].mxu1 %vm289_vm0, %v277_v21  ;;  %1783 = vmatprep.mubr.msk.f32.mxu0 %vm289_vm0, %v270_v22 }
  0x21   : > { %1795 = vmatprep.mubr.msk.f32.mxu1 %vm289_vm0, %v278_v23 }
  0x23   : > { %1784 = vmatmul.mubr.msk.f32.gmra.mrb[6].mxu0 %vm289_vm0, %v271_v24 }
  0x24   : > { %1796 = vmatmul.mubr.msk.f32.gmra.mrb[6].mxu1 %vm289_vm0, %v279_v25 }
  0x84   : > { %v2012_v41 = vpop.permute.xlu1 %757  ;;  %v2063_v60 = vpop.permute.xlu0 %910 }
  0xea   : > { %v1776_v27 = vpop.f32.mrb[0].mxu0 }
  0xeb   : > { %v1788_v28 = vpop.f32.mrb[0].mxu1  ;;  %v1981_v29 = vadd.f32 %v1776_v27, %v1672_v26  ;;  %v404_v30 = vpop.f32.mrb[1].mxu0 }
  0xec   : > { %v1983_v31 = vadd.f32 %v1788_v28, %v1672_v26  ;;  %v444_v32 = vpop.f32.mrb[1].mxu1  ;;  %v1985_v33 = vadd.f32 %v1672_v26, %v404_v30 }
  0xed   : > { %v1987_v34 = vadd.f32 %v1672_v26, %v444_v32  ;;  %484 = vst.msk [vmem:[%s1990_s21 + $0x8] sm:$0xff] %vm289_vm0, %v1981_v29  ;;  %687 = vrot.lane.b32.xlu1 %v1981_v29, %s1855_s26  ;;  %v761_v50 = vmul.f32 %v2012_v41, %v1981_v29  ;;  %v914_v63 = vmul.f32 %v2063_v60, %v1981_v29 }
  0xee   : > { %492 = vst.msk [vmem:[%s1990_s21 + $0x48] sm:$0xff] %vm289_vm0, %v1983_v31  ;;  %483 = vst.msk [vmem:[%s1990_s21] sm:$0xff] %vm289_vm0, %v1985_v33  ;;  %685 = vrot.lane.b32.xlu0 %v1985_v33, %s1855_s26  ;;  %v1779_v35 = vpop.f32.mrb[2].mxu0  ;;  %v769_v59 = vmul.f32 %v2012_v41, %v1983_v31  ;;  %v922_v0 = vmul.f32 %v2063_v60, %v1983_v31  ;;  %v505_v3 = vmul.f32 %v2093_v2, %v1981_v29 }
  0xef   : > { %491 = vst.msk [vmem:[%s1990_s21 + $0x40] sm:$0xff] %vm289_vm0, %v1987_v34  ;;  %v1791_v36 = vpop.f32.mrb[2].mxu1  ;;  %v2008_v37 = vadd.f32 %v1779_v35, %v1672_v26  ;;  %v414_v39 = vpop.f32.mrb[3].mxu0  ;;  %v513_v9 = vmul.f32 %v2093_v2, %v1983_v31  ;;  %v590_v11 = vmul.f32 %v2100_v8, %v1981_v29  ;;  %v760_v7 = vmul.f32 %v2012_v41, %v1985_v33 }
  0xf0   : > { %v2010_v38 = vadd.f32 %v1791_v36, %v1672_v26  ;;  %v454_v40 = vpop.f32.mrb[3].mxu1  ;;  %v2014_v42 = vadd.f32 %v1672_v26, %v414_v39  ;;  %v523_v6 = vsel %vm289_vm0, %v505_v3, 0.0  ;;  %v598_v4 = vmul.f32 %v2100_v8, %v1983_v31 }
  0xf1   : > { %v2016_v43 = vadd.f32 %v1672_v26, %v454_v40  ;;  %486 = vst.msk [vmem:[%s1990_s21 + $0x18] sm:$0xff] %vm289_vm0, %v2008_v37  ;;  %703 = vrot.lane.b32.xlu1 %v1983_v31, %s1855_s26  ;;  %v547_v10 = vsel %vm289_vm0, %v513_v9, 0.0  ;;  %v608_v12 = vsel %vm289_vm0, %v590_v11, 0.0  ;;  %v768_v5 = vmul.f32 %v2012_v41, %v1987_v34 }
  0xf2   : > { %494 = vst.msk [vmem:[%s1990_s21 + $0x58] sm:$0xff] %vm289_vm0, %v2010_v38  ;;  %485 = vst.msk [vmem:[%s1990_s21 + $0x10] sm:$0xff] %vm289_vm0, %v2014_v42  ;;  %v1782_v44 = vpop.f32.mrb[4].mxu0  ;;  %701 = vrot.lane.b32.xlu0 %v1987_v34, %s1855_s26  ;;  %v632_v13 = vsel %vm289_vm0, %v598_v4, 0.0  ;;  %v913_v14 = vmul.f32 %v2063_v60, %v1985_v33  ;;  %v921_v15 = vmul.f32 %v2063_v60, %v1987_v34 }
  0xf3   : > { %493 = vst.msk [vmem:[%s1990_s21 + $0x50] sm:$0xff] %vm289_vm0, %v2016_v43  ;;  %v1794_v45 = vpop.f32.mrb[4].mxu1  ;;  %v2034_v46 = vadd.f32 %v1782_v44, %v1672_v26  ;;  %v424_v48 = vpop.f32.mrb[5].mxu0  ;;  %v504_v16 = vmul.f32 %v2093_v2, %v1985_v33  ;;  %v512_v18 = vmul.f32 %v2093_v2, %v1987_v34  ;;  %v589_v20 = vmul.f32 %v2100_v8, %v1985_v33 }
  0xf4   : > { %v2036_v47 = vadd.f32 %v1794_v45, %v1672_v26  ;;  %v464_v49 = vpop.f32.mrb[5].mxu1  ;;  %v2040_v51 = vadd.f32 %v1672_v26, %v424_v48  ;;  %v763_v21 = vmul.f32 %v2012_v41, %v2008_v37  ;;  %v597_v23 = vmul.f32 %v2100_v8, %v1987_v34 }
  0xf5   : > { %v2042_v52 = vadd.f32 %v1672_v26, %v464_v49  ;;  %488 = vst.msk [vmem:[%s1990_s21 + $0x28] sm:$0xff] %vm289_vm0, %v2034_v46  ;;  %794 = vrot.lane.b32.xlu1 %v761_v50, %s1855_s26  ;;  %v520_v17 = vsel %vm289_vm0, %v504_v16, 0.0  ;;  %v544_v19 = vsel %vm289_vm0, %v512_v18, 0.0  ;;  %v605_v22 = vsel %vm289_vm0, %v589_v20, 0.0 }
  0xf6   : > { %496 = vst.msk [vmem:[%s1990_s21 + $0x68] sm:$0xff] %vm289_vm0, %v2036_v47  ;;  %487 = vst.msk [vmem:[%s1990_s21 + $0x20] sm:$0xff] %vm289_vm0, %v2040_v51  ;;  %v1785_v53 = vpop.f32.mrb[6].mxu0  ;;  %v771_v24 = vmul.f32 %v2012_v41, %v2010_v38  ;;  %v629_v25 = vsel %vm289_vm0, %v597_v23, 0.0  ;;  %v924_v27 = vmul.f32 %v2063_v60, %v2010_v38  ;;  %v762_v32 = vmul.f32 %v2012_v41, %v2014_v42 }
  0xf7   : > { %495 = vst.msk [vmem:[%s1990_s21 + $0x60] sm:$0xff] %vm289_vm0, %v2042_v52  ;;  %v1797_v54 = vpop.f32.mrb[6].mxu1  ;;  %v2057_v55 = vadd.f32 %v1785_v53, %v1672_v26  ;;  %v434_v57 = vpop.f32.mrb[7].mxu0  ;;  %v770_v33 = vmul.f32 %v2012_v41, %v2016_v43  ;;  %v507_v34 = vmul.f32 %v2093_v2, %v2008_v37  ;;  %v515_v36 = vmul.f32 %v2093_v2, %v2010_v38 }
  0xf8   : > { %v2059_v56 = vadd.f32 %v1797_v54, %v1672_v26  ;;  %v474_v58 = vpop.f32.mrb[7].mxu1  ;;  %v2065_v61 = vadd.f32 %v1672_v26, %v434_v57  ;;  %v592_v40 = vmul.f32 %v2100_v8, %v2008_v37  ;;  %v600_v45 = vmul.f32 %v2100_v8, %v2010_v38 }
  0xf9   : > { %v2067_v62 = vadd.f32 %v1672_v26, %v474_v58  ;;  %490 = vst.msk [vmem:[%s1990_s21 + $0x38] sm:$0xff] %vm289_vm0, %v2057_v55  ;;  %810 = vrot.lane.b32.xlu1 %v769_v59, %s1855_s26  ;;  %v916_v26 = vmul.f32 %v2063_v60, %v2008_v37  ;;  %v529_v35 = vsel %vm289_vm0, %v507_v34, 0.0  ;;  %v553_v39 = vsel %vm289_vm0, %v515_v36, 0.0 }
  0xfa   : > { %498 = vst.msk [vmem:[%s1990_s21 + $0x78] sm:$0xff] %vm289_vm0, %v2059_v56  ;;  %489 = vst.msk [vmem:[%s1990_s21 + $0x30] sm:$0xff] %vm289_vm0, %v2065_v61  ;;  %v614_v44 = vsel %vm289_vm0, %v592_v40, 0.0  ;;  %v638_v48 = vsel %vm289_vm0, %v600_v45, 0.0  ;;  %v514_v49 = vmul.f32 %v2093_v2, %v2016_v43  ;;  %v591_v53 = vmul.f32 %v2100_v8, %v2014_v42 }
  0xfb   : > { %497 = vst.msk [vmem:[%s1990_s21 + $0x70] sm:$0xff] %vm289_vm0, %v2067_v62  ;;  %v599_v54 = vmul.f32 %v2100_v8, %v2016_v43  ;;  %v915_v58 = vmul.f32 %v2063_v60, %v2014_v42  ;;  %v772_v11 = vmul.f32 %v2012_v41, %v2042_v52  ;;  %v506_v4 = vmul.f32 %v2093_v2, %v2014_v42 }
  0xfc   : > { %v550_v50 = vsel %vm289_vm0, %v514_v49, 0.0  ;;  %v516_v20 = vmul.f32 %v2093_v2, %v2042_v52  ;;  %v765_v23 = vmul.f32 %v2012_v41, %v2034_v46  ;;  %v920_v36 = vmul.f32 %v2063_v60, %v2057_v55 }
  0xfd   : > { %947 = vrot.lane.b32.xlu1 %v914_v63, %s1855_s26  ;;  %v923_v63 = vmul.f32 %v2063_v60, %v2016_v43  ;;  %v766_v40 = vmul.f32 %v2012_v41, %v2065_v61  ;;  %v509_v45 = vmul.f32 %v2093_v2, %v2034_v46 }
 0x101   : > { %963 = vrot.lane.b32.xlu1 %v922_v0, %s1855_s26 }
 0x111   : > { %524 = vadd.xlane.f32.xlu0 %v523_v6 }
 0x125   : > { %548 = vadd.xlane.f32.xlu1 %v547_v10 }
 0x127   : > { %792 = vrot.lane.b32.xlu0 %v760_v7, %s1855_s26 }
 0x129   : > { %609 = vadd.xlane.f32.xlu1 %v608_v12 }
 0x12b   : > { %808 = vrot.lane.b32.xlu0 %v768_v5, %s1855_s26 }
 0x12d   : > { %633 = vadd.xlane.f32.xlu1 %v632_v13  ;;  %v526_v13 = vsel %vm289_vm0, %v506_v4, 0.0 }
 0x13e   : > { %945 = vrot.lane.b32.xlu1 %v913_v14, %s1855_s26 }
 0x142   : > { %961 = vrot.lane.b32.xlu1 %v921_v15, %s1855_s26 }
 0x146   : > { %691 = vrot.lane.b32.xlu1 %v2008_v37, %s1855_s26  ;;  %v611_v37 = vsel %vm289_vm0, %v591_v53, 0.0  ;;  %v517_v53 = vmul.f32 %v2093_v2, %v2036_v47 }
 0x14a   : > { %707 = vrot.lane.b32.xlu1 %v2010_v38, %s1855_s26  ;;  %521 = vadd.xlane.f32.xlu0 %v520_v17  ;;  %v635_v38 = vsel %vm289_vm0, %v599_v54, 0.0 }
 0x14e   : > { %689 = vrot.lane.b32.xlu1 %v2014_v42, %s1855_s26  ;;  %545 = vadd.xlane.f32.xlu0 %v544_v19  ;;  %v508_v42 = vmul.f32 %v2093_v2, %v2040_v51 }
 0x150   : > { %v532_v19 = vsel %vm289_vm0, %v508_v42, 0.0  ;;  %v518_v42 = vmul.f32 %v2093_v2, %v2067_v62 }
 0x152   : > { %798 = vrot.lane.b32.xlu1 %v763_v21, %s1855_s26  ;;  %606 = vadd.xlane.f32.xlu0 %v605_v22  ;;  %v556_v22 = vsel %vm289_vm0, %v516_v20, 0.0  ;;  %v595_v20 = vmul.f32 %v2100_v8, %v2065_v61 }
 0x156   : > { %814 = vrot.lane.b32.xlu1 %v771_v24, %s1855_s26  ;;  %630 = vadd.xlane.f32.xlu0 %v629_v25  ;;  %v593_v25 = vmul.f32 %v2100_v8, %v2040_v51 }
 0x15a   : > { %951 = vrot.lane.b32.xlu1 %v916_v26, %s1855_s26  ;;  %v773_v26 = vmul.f32 %v2012_v41, %v2036_v47 }
 0x15e   : > { %967 = vrot.lane.b32.xlu1 %v924_v27, %s1855_s26 }
 0x15f   : > { %v688_v28 = vpop.permute.xlu1 %687 }
 0x160   : > { %1690 = vst.msk [vmem:[%s1990_s21 + $0x88] sm:$0xff] %vm289_vm0, %v688_v28  ;;  %v686_v29 = vpop.permute.xlu0 %685  ;;  %v617_v28 = vsel %vm289_vm0, %v593_v25, 0.0 }
 0x161   : > { %1689 = vst.msk [vmem:[%s1990_s21 + $0x80] sm:$0xff] %vm289_vm0, %v686_v29  ;;  %v601_v29 = vmul.f32 %v2100_v8, %v2042_v52 }
 0x163   : > { %v704_v30 = vpop.permute.xlu1 %703 }
 0x164   : > { %1698 = vst.msk [vmem:[%s1990_s21 + $0xc8] sm:$0xff] %vm289_vm0, %v704_v30  ;;  %v702_v31 = vpop.permute.xlu0 %701  ;;  %v918_v30 = vmul.f32 %v2063_v60, %v2034_v46 }
 0x165   : > { %1697 = vst.msk [vmem:[%s1990_s21 + $0xc0] sm:$0xff] %vm289_vm0, %v702_v31 }
 0x167   : > { %v2190_v57 = vpop.permute.xlu1 %794 }
 0x168   : > { %v843_v25 = vsel %vm289_vm0, %v2190_v57, 0.0 }
 0x16b   : > { %v2202_v0 = vpop.permute.xlu1 %810 }
 0x16c   : > { %705 = vrot.lane.b32.xlu0 %v2016_v43, %s1855_s26  ;;  %v764_v43 = vmul.f32 %v2012_v41, %v2040_v51 }
 0x16f   : > { %v2205_v1 = vpop.permute.xlu1 %947 }
 0x170   : > { %796 = vrot.lane.b32.xlu0 %v762_v32, %s1855_s26  ;;  %v641_v32 = vsel %vm289_vm0, %v601_v29, 0.0 }
 0x173   : > { %v2207_v3 = vpop.permute.xlu1 %963 }
 0x174   : > { %812 = vrot.lane.b32.xlu0 %v770_v33, %s1855_s26  ;;  %v926_v33 = vmul.f32 %v2063_v60, %v2036_v47 }
 0x182   : > { %530 = vadd.xlane.f32.xlu1 %v529_v35 }
 0x186   : > { %554 = vadd.xlane.f32.xlu1 %v553_v39 }
 0x18a   : > { %615 = vadd.xlane.f32.xlu1 %v614_v44 }
 0x18e   : > { %639 = vadd.xlane.f32.xlu1 %v638_v48  ;;  %v774_v48 = vmul.f32 %v2012_v41, %v2067_v62 }
 0x193   : > { %551 = vadd.xlane.f32.xlu0 %v550_v50  ;;  %v535_v50 = vsel %vm289_vm0, %v509_v45, 0.0 }
 0x197   : > { %612 = vadd.xlane.f32.xlu0 %v611_v37  ;;  %v927_v37 = vmul.f32 %v2063_v60, %v2067_v62 }
 0x19b   : > { %636 = vadd.xlane.f32.xlu0 %v635_v38  ;;  %v559_v38 = vsel %vm289_vm0, %v517_v53, 0.0 }
 0x19e   : > { %v525_v59 = vpop.xlane.xlu0 %524 }
 0x19f   : > { %570 = vst.msk [vmem:[%s2195_s7 + $0x8] sm:$0xff] %vm568_vm1, %v525_v59  ;;  %949 = vrot.lane.b32.xlu1 %v915_v58, %s1855_s26  ;;  %v594_v58 = vmul.f32 %v2100_v8, %v2034_v46 }
 0x1a2   : > { %v2239_v15 = vpop.permute.xlu0 %792 }
 0x1a3   : > { %965 = vrot.lane.b32.xlu1 %v923_v63, %s1855_s26 }
 0x1a6   : > { %v2243_v17 = vpop.permute.xlu0 %808 }
 0x1b1   : > { %693 = vrot.lane.b32.xlu0 %v2040_v51, %s1855_s26 }
 0x1b2   : > { %v549_v6 = vpop.xlane.xlu1 %548 }
 0x1b3   : > { %578 = vst.msk [vmem:[%s2195_s7 + $0x48] sm:$0xff] %vm568_vm1, %v549_v6  ;;  %v620_v6 = vsel %vm289_vm0, %v594_v58, 0.0 }
 0x1b5   : > { %709 = vrot.lane.b32.xlu0 %v2042_v52, %s1855_s26 }
 0x1b6   : > { %v610_v9 = vpop.xlane.xlu1 %609 }
 0x1b7   : > { %654 = vst.msk [vmem:[%s2216_s8 + $0x8] sm:$0xff] %vm568_vm1, %v610_v9  ;;  %v602_v9 = vmul.f32 %v2100_v8, %v2036_v47 }
 0x1b9   : > { %800 = vrot.lane.b32.xlu0 %v764_v43, %s1855_s26 }
 0x1ba   : > { %v634_v10 = vpop.xlane.xlu1 %633 }
 0x1bb   : > { %662 = vst.msk [vmem:[%s2216_s8 + $0x48] sm:$0xff] %vm568_vm1, %v634_v10 }
 0x1bd   : > { %816 = vrot.lane.b32.xlu0 %v772_v11, %s1855_s26 }
 0x1be   : > { %v2228_v7 = vpop.permute.xlu1 %945 }
 0x1bf   : > { %v993_v57 = vsel %vm289_vm0, %v2228_v7, 0.0 }
 0x1c2   : > { %v2230_v12 = vpop.permute.xlu1 %961 }
 0x1c3   : > { %v1017_v29 = vsel %vm289_vm0, %v2230_v12, 0.0 }
 0x1c6   : > { %v692_v5 = vpop.permute.xlu1 %691 }
 0x1c7   : > { %1692 = vst.msk [vmem:[%s1990_s21 + $0x98] sm:$0xff] %vm289_vm0, %v692_v5  ;;  %527 = vadd.xlane.f32.xlu1 %v526_v13  ;;  %v917_v13 = vmul.f32 %v2063_v60, %v2040_v51  ;;  %v562_v51 = vsel %vm289_vm0, %v518_v42, 0.0 }
 0x1ca   : > { %v708_v14 = vpop.permute.xlu1 %707 }
 0x1cb   : > { %1700 = vst.msk [vmem:[%s1990_s21 + $0xd8] sm:$0xff] %vm289_vm0, %v708_v14 }
 0x1ce   : > { %v690_v16 = vpop.permute.xlu1 %689 }
 0x1cf   : > { %1691 = vst.msk [vmem:[%s1990_s21 + $0x90] sm:$0xff] %vm289_vm0, %v690_v16 }
 0x1d2   : > { %v2283_v34 = vpop.permute.xlu1 %798 }
 0x1d6   : > { %v2287_v35 = vpop.permute.xlu1 %814 }
 0x1d7   : > { %v522_v18 = vpop.xlane.xlu0 %521 }
 0x1d8   : > { %569 = vst.msk [vmem:[%s2195_s7] sm:$0xff] %vm568_vm1, %v522_v18  ;;  %695 = vrot.lane.b32.xlu1 %v2034_v46, %s1855_s26  ;;  %v644_v46 = vsel %vm289_vm0, %v602_v9, 0.0  ;;  %v925_v18 = vmul.f32 %v2063_v60, %v2042_v52  ;;  %v603_v52 = vmul.f32 %v2100_v8, %v2067_v62 }
 0x1da   : > { %v2293_v39 = vpop.permute.xlu1 %951 }
 0x1db   : > { %v546_v21 = vpop.xlane.xlu0 %545 }
 0x1dc   : > { %577 = vst.msk [vmem:[%s2195_s7 + $0x40] sm:$0xff] %vm568_vm1, %v546_v21  ;;  %711 = vrot.lane.b32.xlu1 %v2036_v47, %s1855_s26  ;;  %533 = vadd.xlane.f32.xlu0 %v532_v19  ;;  %v510_v47 = vmul.f32 %v2093_v2, %v2065_v61  ;;  %v623_v21 = vsel %vm289_vm0, %v595_v20, 0.0  ;;  %v873_v20 = vsel %vm289_vm0, %v2287_v35, 0.0 }
 0x1de   : > { %v2299_v44 = vpop.permute.xlu1 %967  ;;  %v538_v16 = vsel %vm289_vm0, %v510_v47, 0.0 }
 0x1df   : > { %v607_v24 = vpop.xlane.xlu0 %606 }
 0x1e0   : > { %653 = vst.msk [vmem:[%s2216_s8] sm:$0xff] %vm568_vm1, %v607_v24  ;;  %802 = vrot.lane.b32.xlu1 %v765_v23, %s1855_s26  ;;  %557 = vadd.xlane.f32.xlu0 %v556_v22  ;;  %v647_v22 = vsel %vm289_vm0, %v603_v52, 0.0  ;;  %v767_v23 = vmul.f32 %v2012_v41, %v2057_v55  ;;  %v775_v24 = vmul.f32 %v2012_v41, %v2059_v56  ;;  %v864_v41 = vsel %vm289_vm0, %v2243_v17, 0.0 }
 0x1e3   : > { %v631_v27 = vpop.xlane.xlu0 %630 }
 0x1e4   : > { %661 = vst.msk [vmem:[%s2216_s8 + $0x40] sm:$0xff] %vm568_vm1, %v631_v27  ;;  %818 = vrot.lane.b32.xlu1 %v773_v26, %s1855_s26  ;;  %618 = vadd.xlane.f32.xlu0 %v617_v28  ;;  %v840_v26 = vsel %vm289_vm0, %v2239_v15, 0.0 }
 0x1e7   : > { %v706_v31 = vpop.permute.xlu0 %705 }
 0x1e8   : > { %1699 = vst.msk [vmem:[%s1990_s21 + $0xd0] sm:$0xff] %vm289_vm0, %v706_v31  ;;  %955 = vrot.lane.b32.xlu1 %v918_v30, %s1855_s26  ;;  %642 = vadd.xlane.f32.xlu0 %v641_v32  ;;  %v849_v30 = vsel %vm289_vm0, %v2283_v34, 0.0 }
 0x1eb   : > { %v2319_v59 = vpop.permute.xlu0 %796 }
 0x1ec   : > { %971 = vrot.lane.b32.xlu1 %v926_v33, %s1855_s26 }
 0x1ef   : > { %v813_v10 = vpop.permute.xlu0 %812 }
 0x1f0   : > { %v870_v31 = vsel %vm289_vm0, %v813_v10, 0.0 }
 0x1fe   : > { %697 = vrot.lane.b32.xlu0 %v2065_v61, %s1855_s26 }
 0x202   : > { %713 = vrot.lane.b32.xlu0 %v2067_v62, %s1855_s26  ;;  %v928_v62 = vmul.f32 %v2063_v60, %v2059_v56 }
 0x206   : > { %959 = vrot.lane.b32.xlu0 %v920_v36, %s1855_s26  ;;  %v511_v36 = vmul.f32 %v2093_v2, %v2057_v55 }
 0x208   : > { %v541_v45 = vsel %vm289_vm0, %v511_v36, 0.0 }
 0x20a   : > { %804 = vrot.lane.b32.xlu0 %v766_v40, %s1855_s26 }
 0x20e   : > { %820 = vrot.lane.b32.xlu0 %v774_v48, %s1855_s26 }
 0x20f   : > { %v531_v49 = vpop.xlane.xlu1 %530 }
 0x210   : > { %572 = vst.msk [vmem:[%s2195_s7 + $0x18] sm:$0xff] %vm568_vm1, %v531_v49  ;;  %536 = vadd.xlane.f32.xlu1 %v535_v50  ;;  %v519_v49 = vmul.f32 %v2093_v2, %v2059_v56  ;;  %v604_v2 = vmul.f32 %v2100_v8, %v2059_v56 }
 0x212   : > { %973 = vrot.lane.b32.xlu0 %v927_v37, %s1855_s26  ;;  %v565_v53 = vsel %vm289_vm0, %v519_v49, 0.0  ;;  %v596_v37 = vmul.f32 %v2100_v8, %v2057_v55 }
 0x213   : > { %v555_v54 = vpop.xlane.xlu1 %554 }
 0x214   : > { %580 = vst.msk [vmem:[%s2195_s7 + $0x58] sm:$0xff] %vm568_vm1, %v555_v54  ;;  %560 = vadd.xlane.f32.xlu1 %v559_v38  ;;  %v626_v38 = vsel %vm289_vm0, %v596_v37, 0.0 }
 0x217   : > { %v616_v63 = vpop.xlane.xlu1 %615 }
 0x218   : > { %656 = vst.msk [vmem:[%s2216_s8 + $0x18] sm:$0xff] %vm568_vm1, %v616_v63  ;;  %621 = vadd.xlane.f32.xlu1 %v620_v6  ;;  %v650_v63 = vsel %vm289_vm0, %v604_v2, 0.0 }
 0x21b   : > { %v640_v43 = vpop.xlane.xlu1 %639 }
 0x21c   : > { %664 = vst.msk [vmem:[%s2216_s8 + $0x58] sm:$0xff] %vm568_vm1, %v640_v43  ;;  %645 = vadd.xlane.f32.xlu1 %v644_v46 }
 0x21f   : > { %v950_v27 = vpop.permute.xlu1 %949 }
 0x220   : > { %v552_v11 = vpop.xlane.xlu0 %551  ;;  %v999_v32 = vsel %vm289_vm0, %v950_v27, 0.0 }
 0x221   : > { %579 = vst.msk [vmem:[%s2195_s7 + $0x50] sm:$0xff] %vm568_vm1, %v552_v11 }
 0x223   : > { %v966_v28 = vpop.permute.xlu1 %965 }
 0x224   : > { %v613_v4 = vpop.xlane.xlu0 %612  ;;  %v1023_v33 = vsel %vm289_vm0, %v966_v28, 0.0 }
 0x225   : > { %655 = vst.msk [vmem:[%s2216_s8 + $0x10] sm:$0xff] %vm568_vm1, %v613_v4 }
 0x228   : > { %v637_v5 = vpop.xlane.xlu0 %636 }
 0x229   : > { %663 = vst.msk [vmem:[%s2216_s8 + $0x50] sm:$0xff] %vm568_vm1, %v637_v5 }
 0x22c   : > { %v694_v14 = vpop.permute.xlu0 %693 }
 0x22d   : > { %1693 = vst.msk [vmem:[%s1990_s21 + $0xa0] sm:$0xff] %vm289_vm0, %v694_v14  ;;  %953 = vrot.lane.b32.xlu1 %v917_v13, %s1855_s26  ;;  %v996_v14 = vsel %vm289_vm0, %v2205_v1, 0.0 }
 0x230   : > { %v710_v19 = vpop.permute.xlu0 %709 }
 0x231   : > { %1701 = vst.msk [vmem:[%s1990_s21 + $0xe0] sm:$0xff] %vm289_vm0, %v710_v19  ;;  %969 = vrot.lane.b32.xlu1 %v925_v18, %s1855_s26  ;;  %539 = vadd.xlane.f32.xlu0 %v538_v16  ;;  %v1020_v19 = vsel %vm289_vm0, %v2207_v3, 0.0  ;;  %v1002_v3 = vsel %vm289_vm0, %v2293_v39, 0.0  ;;  %v846_v39 = vsel %vm289_vm0, %v2319_v59, 0.0 }
 0x234   : > { %v801_v12 = vpop.permute.xlu0 %800 }
 0x235   : > { %699 = vrot.lane.b32.xlu1 %v2057_v55, %s1855_s26  ;;  %563 = vadd.xlane.f32.xlu0 %v562_v51  ;;  %v852_v34 = vsel %vm289_vm0, %v801_v12, 0.0 }
 0x238   : > { %v817_v40 = vpop.permute.xlu0 %816 }
 0x239   : > { %715 = vrot.lane.b32.xlu1 %v2059_v56, %s1855_s26  ;;  %624 = vadd.xlane.f32.xlu0 %v623_v21  ;;  %v876_v48 = vsel %vm289_vm0, %v817_v40, 0.0  ;;  %v919_v56 = vmul.f32 %v2063_v60, %v2065_v61  ;;  %v867_v60 = vsel %vm289_vm0, %v2202_v0, 0.0 }
 0x23d   : > { %806 = vrot.lane.b32.xlu1 %v767_v23, %s1855_s26  ;;  %648 = vadd.xlane.f32.xlu0 %v647_v22  ;;  %v1026_v23 = vsel %vm289_vm0, %v2299_v44, 0.0 }
 0x241   : > { %822 = vrot.lane.b32.xlu1 %v775_v24, %s1855_s26  ;;  %844 = vadd.xlane.f32.xlu0 %v843_v25 }
 0x245   : > { %975 = vrot.lane.b32.xlu1 %v928_v62, %s1855_s26  ;;  %841 = vadd.xlane.f32.xlu0 %v840_v26 }
 0x249   : > { %865 = vadd.xlane.f32.xlu0 %v864_v41 }
 0x24d   : > { %994 = vadd.xlane.f32.xlu0 %v993_v57 }
 0x251   : > { %1018 = vadd.xlane.f32.xlu0 %v1017_v29 }
 0x254   : > { %v528_v15 = vpop.xlane.xlu1 %527 }
 0x255   : > { %571 = vst.msk [vmem:[%s2195_s7 + $0x10] sm:$0xff] %vm568_vm1, %v528_v15  ;;  %850 = vadd.xlane.f32.xlu0 %v849_v30 }
 0x258   : > { %v696_v17 = vpop.permute.xlu1 %695 }
 0x259   : > { %1694 = vst.msk [vmem:[%s1990_s21 + $0xa8] sm:$0xff] %vm289_vm0, %v696_v17  ;;  %871 = vadd.xlane.f32.xlu0 %v870_v31 }
 0x25c   : > { %v712_v7 = vpop.permute.xlu1 %711 }
 0x25d   : > { %1702 = vst.msk [vmem:[%s1990_s21 + $0xe8] sm:$0xff] %vm289_vm0, %v712_v7  ;;  %1000 = vadd.xlane.f32.xlu0 %v999_v32 }
 0x260   : > { %v803_v8 = vpop.permute.xlu1 %802 }
 0x261   : > { %1024 = vadd.xlane.f32.xlu0 %v1023_v33  ;;  %v855_v62 = vsel %vm289_vm0, %v803_v8, 0.0 }
 0x264   : > { %v819_v43 = vpop.permute.xlu1 %818 }
 0x265   : > { %853 = vadd.xlane.f32.xlu0 %v852_v34  ;;  %v879_v44 = vsel %vm289_vm0, %v819_v43, 0.0 }
 0x268   : > { %v956_v46 = vpop.permute.xlu1 %955 }
 0x269   : > { %542 = vadd.xlane.f32.xlu1 %v541_v45  ;;  %877 = vadd.xlane.f32.xlu0 %v876_v48  ;;  %v534_v50 = vpop.xlane.xlu0 %533  ;;  %v1008_v59 = vsel %vm289_vm0, %v956_v46, 0.0 }
 0x26a   : > { %573 = vst.msk [vmem:[%s2195_s7 + $0x20] sm:$0xff] %vm568_vm1, %v534_v50 }
 0x26c   : > { %v972_v10 = vpop.permute.xlu1 %971 }
 0x26d   : > { %566 = vadd.xlane.f32.xlu1 %v565_v53  ;;  %v558_v54 = vpop.xlane.xlu0 %557  ;;  %v1032_v28 = vsel %vm289_vm0, %v972_v10, 0.0 }
 0x26e   : > { %581 = vst.msk [vmem:[%s2195_s7 + $0x60] sm:$0xff] %vm568_vm1, %v558_v54 }
 0x271   : > { %627 = vadd.xlane.f32.xlu1 %v626_v38  ;;  %v619_v58 = vpop.xlane.xlu0 %618 }
 0x272   : > { %657 = vst.msk [vmem:[%s2216_s8 + $0x20] sm:$0xff] %vm568_vm1, %v619_v58 }
 0x275   : > { %651 = vadd.xlane.f32.xlu1 %v650_v63  ;;  %v643_v55 = vpop.xlane.xlu0 %642 }
 0x276   : > { %665 = vst.msk [vmem:[%s2216_s8 + $0x60] sm:$0xff] %vm568_vm1, %v643_v55 }
 0x279   : > { %v698_v6 = vpop.permute.xlu0 %697 }
 0x27a   : > { %1695 = vst.msk [vmem:[%s1990_s21 + $0xb0] sm:$0xff] %vm289_vm0, %v698_v6 }
 0x27d   : > { %v714_v9 = vpop.permute.xlu0 %713 }
 0x27e   : > { %1703 = vst.msk [vmem:[%s1990_s21 + $0xf0] sm:$0xff] %vm289_vm0, %v714_v9 }
 0x281   : > { %v2426_v47 = vpop.permute.xlu0 %959 }
 0x282   : > { %v1014_v32 = vsel %vm289_vm0, %v2426_v47, 0.0 }
 0x285   : > { %v805_v16 = vpop.permute.xlu0 %804 }
 0x286   : > { %957 = vrot.lane.b32.xlu1 %v919_v56, %s1855_s26  ;;  %v858_v21 = vsel %vm289_vm0, %v805_v16, 0.0 }
 0x289   : > { %v821_v51 = vpop.permute.xlu0 %820 }
 0x28a   : > { %v882_v35 = vsel %vm289_vm0, %v821_v51, 0.0  ;;  %v1165_v51 = vld [vmem:[%s1990_s21] sm:$0xff] (%p1916_p4) }
 0x28b   : > { %1166 = vst [vmem:[%s2555_s12] sm:$0xff] (%p1916_p4), %v1165_v51 }
 0x28d   : > { %v2445_v22 = vpop.permute.xlu0 %973 }
 0x28e   : > { %v1035_v63 = vsel %vm289_vm0, %v2445_v22, 0.0  ;;  %v1177_v22 = vld [vmem:[%s1990_s21 + $0x30] sm:$0xff] (%p1916_p4) }
 0x28f   : > { %1178 = vst [vmem:[%s2555_s12 + $0x30] sm:$0xff] (%p1916_p4), %v1177_v22 }
 0x29d   : > { %v537_v11 = vpop.xlane.xlu1 %536 }
 0x29e   : > { %574 = vst.msk [vmem:[%s2195_s7 + $0x28] sm:$0xff] %vm568_vm1, %v537_v11 }
 0x2a1   : > { %v561_v4 = vpop.xlane.xlu1 %560 }
 0x2a2   : > { %582 = vst.msk [vmem:[%s2195_s7 + $0x68] sm:$0xff] %vm568_vm1, %v561_v4 }
 0x2a5   : > { %v622_v5 = vpop.xlane.xlu1 %621 }
 0x2a6   : > { %658 = vst.msk [vmem:[%s2216_s8 + $0x28] sm:$0xff] %vm568_vm1, %v622_v5 }
 0x2a9   : > { %v646_v13 = vpop.xlane.xlu1 %645 }
 0x2aa   : > { %666 = vst.msk [vmem:[%s2216_s8 + $0x68] sm:$0xff] %vm568_vm1, %v646_v13  ;;  %868 = vadd.xlane.f32.xlu1 %v867_v60 }
 0x2ad   : > { %v954_v61 = vpop.permute.xlu1 %953 }
 0x2ae   : > { %997 = vadd.xlane.f32.xlu1 %v996_v14  ;;  %v1005_v42 = vsel %vm289_vm0, %v954_v61, 0.0 }
 0x2af   : > { %1006 = vadd.xlane.f32.xlu0 %v1005_v42 }
 0x2b1   : > { %v970_v18 = vpop.permute.xlu1 %969 }
 0x2b2   : > { %1021 = vadd.xlane.f32.xlu1 %v1020_v19  ;;  %v1029_v0 = vsel %vm289_vm0, %v970_v18, 0.0 }
 0x2b3   : > { %1030 = vadd.xlane.f32.xlu0 %v1029_v0 }
 0x2b5   : > { %v700_v1 = vpop.permute.xlu1 %699 }
 0x2b6   : > { %1696 = vst.msk [vmem:[%s1990_s21 + $0xb8] sm:$0xff] %vm289_vm0, %v700_v1  ;;  %874 = vadd.xlane.f32.xlu1 %v873_v20  ;;  %v1167_v20 = vld [vmem:[%s1990_s21 + $0x8] sm:$0xff] (%p1916_p4)  ;;  %v1169_v1 = vld [vmem:[%s1990_s21 + $0x10] sm:$0xff] (%p1916_p4) }
 0x2b7   : > { %859 = vadd.xlane.f32.xlu0 %v858_v21  ;;  %v1171_v21 = vld [vmem:[%s1990_s21 + $0x18] sm:$0xff] (%p1916_p4)  ;;  %1168 = vst [vmem:[%s2555_s12 + $0x8] sm:$0xff] (%p1916_p4), %v1167_v20  ;;  %1170 = vst [vmem:[%s2555_s12 + $0x10] sm:$0xff] (%p1916_p4), %v1169_v1 }
 0x2b8   : > { %1172 = vst [vmem:[%s2555_s12 + $0x18] sm:$0xff] (%p1916_p4), %v1171_v21 }
 0x2b9   : > { %v716_v52 = vpop.permute.xlu1 %715 }
 0x2ba   : > { %1704 = vst.msk [vmem:[%s1990_s21 + $0xf8] sm:$0xff] %vm289_vm0, %v716_v52  ;;  %1003 = vadd.xlane.f32.xlu1 %v1002_v3  ;;  %v1173_v3 = vld [vmem:[%s1990_s21 + $0x20] sm:$0xff] (%p1916_p4)  ;;  %v1175_v52 = vld [vmem:[%s1990_s21 + $0x28] sm:$0xff] (%p1916_p4) }
 0x2bb   : > { %883 = vadd.xlane.f32.xlu0 %v882_v35  ;;  %1174 = vst [vmem:[%s2555_s12 + $0x20] sm:$0xff] (%p1916_p4), %v1173_v3  ;;  %1176 = vst [vmem:[%s2555_s12 + $0x28] sm:$0xff] (%p1916_p4), %v1175_v52  ;;  %v1179_v35 = vld [vmem:[%s1990_s21 + $0x38] sm:$0xff] (%p1916_p4) }
 0x2bc   : > { %1180 = vst [vmem:[%s2555_s12 + $0x38] sm:$0xff] (%p1916_p4), %v1179_v35 }
 0x2bd   : > { %v807_v57 = vpop.permute.xlu1 %806 }
 0x2be   : > { %1027 = vadd.xlane.f32.xlu1 %v1026_v23  ;;  %v540_v24 = vpop.xlane.xlu0 %539  ;;  %v861_v15 = vsel %vm289_vm0, %v807_v57, 0.0  ;;  %v1181_v23 = vld [vmem:[%s1990_s21 + $0x40] sm:$0xff] (%p1916_p4)  ;;  %v1201_v57 = vld [vmem:[%s1990_s21 + $0x90] sm:$0xff] (%p1916_p4) }
 0x2bf   : > { %575 = vst.msk [vmem:[%s2195_s7 + $0x30] sm:$0xff] %vm568_vm1, %v540_v24  ;;  %1182 = vst [vmem:[%s2555_s12 + $0x40] sm:$0xff] (%p1916_p4), %v1181_v23  ;;  %v1183_v24 = vld [vmem:[%s1990_s21 + $0x48] sm:$0xff] (%p1916_p4) }
 0x2c0   : > { %1184 = vst [vmem:[%s2555_s12 + $0x48] sm:$0xff] (%p1916_p4), %v1183_v24  ;;  %1202 = vst [vmem:[%s2555_s12 + $0x110] sm:$0xff] (%p1916_p4), %v1201_v57 }
 0x2c1   : > { %v823_v30 = vpop.permute.xlu1 %822 }
 0x2c2   : > { %847 = vadd.xlane.f32.xlu1 %v846_v39  ;;  %v564_v25 = vpop.xlane.xlu0 %563  ;;  %v885_v31 = vsel %vm289_vm0, %v823_v30, 0.0  ;;  %v1185_v39 = vld [vmem:[%s1990_s21 + $0x50] sm:$0xff] (%p1916_p4) }
 0x2c3   : > { %583 = vst.msk [vmem:[%s2195_s7 + $0x70] sm:$0xff] %vm568_vm1, %v564_v25  ;;  %v1187_v25 = vld [vmem:[%s1990_s21 + $0x58] sm:$0xff] (%p1916_p4)  ;;  %1186 = vst [vmem:[%s2555_s12 + $0x50] sm:$0xff] (%p1916_p4), %v1185_v39  ;;  %v1209_v30 = vld [vmem:[%s1990_s21 + $0xb0] sm:$0xff] (%p1916_p4) }
 0x2c4   : > { %1188 = vst [vmem:[%s2555_s12 + $0x58] sm:$0xff] (%p1916_p4), %v1187_v25  ;;  %1210 = vst [vmem:[%s2555_s12 + $0x130] sm:$0xff] (%p1916_p4), %v1209_v30 }
 0x2c5   : > { %v976_v12 = vpop.permute.xlu1 %975 }
 0x2c6   : > { %856 = vadd.xlane.f32.xlu1 %v855_v62  ;;  %v625_v26 = vpop.xlane.xlu0 %624  ;;  %v1038_v34 = vsel %vm289_vm0, %v976_v12, 0.0  ;;  %v1189_v62 = vld [vmem:[%s1990_s21 + $0x60] sm:$0xff] (%p1916_p4)  ;;  %v1219_v12 = vld [vmem:[%s1990_s21 + $0xd8] sm:$0xff] (%p1916_p4) }
 0x2c7   : > { %659 = vst.msk [vmem:[%s2216_s8 + $0x30] sm:$0xff] %vm568_vm1, %v625_v26  ;;  %v1191_v26 = vld [vmem:[%s1990_s21 + $0x68] sm:$0xff] (%p1916_p4)  ;;  %1190 = vst [vmem:[%s2555_s12 + $0x60] sm:$0xff] (%p1916_p4), %v1189_v62 }
 0x2c8   : > { %1192 = vst [vmem:[%s2555_s12 + $0x68] sm:$0xff] (%p1916_p4), %v1191_v26  ;;  %1220 = vst [vmem:[%s2555_s12 + $0x158] sm:$0xff] (%p1916_p4), %v1219_v12 }
 0x2ca   : > { %880 = vadd.xlane.f32.xlu1 %v879_v44  ;;  %v649_v41 = vpop.xlane.xlu0 %648  ;;  %v1193_v44 = vld [vmem:[%s1990_s21 + $0x70] sm:$0xff] (%p1916_p4) }
 0x2cb   : > { %667 = vst.msk [vmem:[%s2216_s8 + $0x70] sm:$0xff] %vm568_vm1, %v649_v41  ;;  %1194 = vst [vmem:[%s2555_s12 + $0x70] sm:$0xff] (%p1916_p4), %v1193_v44  ;;  %v1195_v41 = vld [vmem:[%s1990_s21 + $0x78] sm:$0xff] (%p1916_p4) }
 0x2cc   : > { %1196 = vst [vmem:[%s2555_s12 + $0x78] sm:$0xff] (%p1916_p4), %v1195_v41 }
 0x2ce   : > { %1009 = vadd.xlane.f32.xlu1 %v1008_v59  ;;  %v845_v27 = vpop.xlane.xlu0 %844  ;;  %v1197_v59 = vld [vmem:[%s1990_s21 + $0x80] sm:$0xff] (%p1916_p4) }
 0x2cf   : > { %1707 = vst.msk [vmem:[%s2195_s7 + $0x88] sm:$0xff] %vm568_vm1, %v845_v27  ;;  %v1199_v27 = vld [vmem:[%s1990_s21 + $0x88] sm:$0xff] (%p1916_p4)  ;;  %1198 = vst [vmem:[%s2555_s12 + $0x100] sm:$0xff] (%p1916_p4), %v1197_v59 }
 0x2d0   : > { %1200 = vst [vmem:[%s2555_s12 + $0x108] sm:$0xff] (%p1916_p4), %v1199_v27 }
 0x2d2   : > { %1033 = vadd.xlane.f32.xlu1 %v1032_v28  ;;  %v842_v29 = vpop.xlane.xlu0 %841  ;;  %v1203_v28 = vld [vmem:[%s1990_s21 + $0x98] sm:$0xff] (%p1916_p4) }
 0x2d3   : > { %1706 = vst.msk [vmem:[%s2195_s7 + $0x80] sm:$0xff] %vm568_vm1, %v842_v29  ;;  %v1205_v29 = vld [vmem:[%s1990_s21 + $0xa0] sm:$0xff] (%p1916_p4)  ;;  %1204 = vst [vmem:[%s2555_s12 + $0x118] sm:$0xff] (%p1916_p4), %v1203_v28 }
 0x2d4   : > { %1206 = vst [vmem:[%s2555_s12 + $0x120] sm:$0xff] (%p1916_p4), %v1205_v29 }
 0x2d6   : > { %862 = vadd.xlane.f32.xlu1 %v861_v15  ;;  %v866_v17 = vpop.xlane.xlu0 %865  ;;  %v1207_v15 = vld [vmem:[%s1990_s21 + $0xa8] sm:$0xff] (%p1916_p4) }
 0x2d7   : > { %1714 = vst.msk [vmem:[%s2195_s7 + $0xc0] sm:$0xff] %vm568_vm1, %v866_v17  ;;  %v1211_v17 = vld [vmem:[%s1990_s21 + $0xb8] sm:$0xff] (%p1916_p4)  ;;  %1208 = vst [vmem:[%s2555_s12 + $0x128] sm:$0xff] (%p1916_p4), %v1207_v15 }
 0x2d8   : > { %1212 = vst [vmem:[%s2555_s12 + $0x138] sm:$0xff] (%p1916_p4), %v1211_v17 }
 0x2da   : > { %886 = vadd.xlane.f32.xlu1 %v885_v31  ;;  %v995_v7 = vpop.xlane.xlu0 %994  ;;  %v1213_v31 = vld [vmem:[%s1990_s21 + $0xc0] sm:$0xff] (%p1916_p4) }
 0x2db   : > { %1722 = vst.msk [vmem:[%s2216_s8 + $0x80] sm:$0xff] %vm568_vm1, %v995_v7  ;;  %v1215_v7 = vld [vmem:[%s1990_s21 + $0xc8] sm:$0xff] (%p1916_p4)  ;;  %1214 = vst [vmem:[%s2555_s12 + $0x140] sm:$0xff] (%p1916_p4), %v1213_v31 }
 0x2dc   : > { %1216 = vst [vmem:[%s2555_s12 + $0x148] sm:$0xff] (%p1916_p4), %v1215_v7 }
 0x2de   : > { %1015 = vadd.xlane.f32.xlu1 %v1014_v32  ;;  %v1019_v33 = vpop.xlane.xlu0 %1018  ;;  %v1217_v32 = vld [vmem:[%s1990_s21 + $0xd0] sm:$0xff] (%p1916_p4) }
 0x2df   : > { %1730 = vst.msk [vmem:[%s2216_s8 + $0xc0] sm:$0xff] %vm568_vm1, %v1019_v33  ;;  %1218 = vst [vmem:[%s2555_s12 + $0x150] sm:$0xff] (%p1916_p4), %v1217_v32  ;;  %v1221_v33 = vld [vmem:[%s1990_s21 + $0xe0] sm:$0xff] (%p1916_p4) }
 0x2e0   : > { %1222 = vst [vmem:[%s2555_s12 + $0x160] sm:$0xff] (%p1916_p4), %v1221_v33 }
 0x2e2   : > { %1039 = vadd.xlane.f32.xlu1 %v1038_v34  ;;  %v851_v36 = vpop.xlane.xlu0 %850  ;;  %v1223_v34 = vld [vmem:[%s1990_s21 + $0xe8] sm:$0xff] (%p1916_p4) }
 0x2e3   : > { %1709 = vst.msk [vmem:[%s2195_s7 + $0x98] sm:$0xff] %vm568_vm1, %v851_v36  ;;  %1224 = vst [vmem:[%s2555_s12 + $0x168] sm:$0xff] (%p1916_p4), %v1223_v34  ;;  %v1225_v36 = vld [vmem:[%s1990_s21 + $0xf0] sm:$0xff] (%p1916_p4) }
 0x2e4   : > { %1226 = vst [vmem:[%s2555_s12 + $0x170] sm:$0xff] (%p1916_p4), %v1225_v36 }
 0x2e6   : > { %v872_v40 = vpop.xlane.xlu0 %871 }
 0x2e7   : > { %1716 = vst.msk [vmem:[%s2195_s7 + $0xd0] sm:$0xff] %vm568_vm1, %v872_v40  ;;  %v1227_v40 = vld [vmem:[%s1990_s21 + $0xf8] sm:$0xff] (%p1916_p4) }
 0x2e8   : > { %1228 = vst [vmem:[%s2555_s12 + $0x178] sm:$0xff] (%p1916_p4), %v1227_v40 }
 0x2ea   : > { %v1001_v45 = vpop.xlane.xlu0 %1000 }
 0x2eb   : > { %1724 = vst.msk [vmem:[%s2216_s8 + $0x90] sm:$0xff] %vm568_vm1, %v1001_v45 }
 0x2ee   : > { %v1025_v48 = vpop.xlane.xlu0 %1024 }
 0x2ef   : > { %1732 = vst.msk [vmem:[%s2216_s8 + $0xd0] sm:$0xff] %vm568_vm1, %v1025_v48 }
 0x2f2   : > { %v854_v49 = vpop.xlane.xlu0 %853 }
 0x2f3   : > { %1710 = vst.msk [vmem:[%s2195_s7 + $0xa0] sm:$0xff] %vm568_vm1, %v854_v49 }
 0x2f6   : > { %v543_v50 = vpop.xlane.xlu1 %542  ;;  %v878_v53 = vpop.xlane.xlu0 %877 }
 0x2f7   : > { %576 = vst.msk [vmem:[%s2195_s7 + $0x38] sm:$0xff] %vm568_vm1, %v543_v50  ;;  %1718 = vst.msk [vmem:[%s2195_s7 + $0xe0] sm:$0xff] %vm568_vm1, %v878_v53 }
 0x2fa   : > { %v567_v37 = vpop.xlane.xlu1 %566 }
 0x2fb   : > { %584 = vst.msk [vmem:[%s2195_s7 + $0x78] sm:$0xff] %vm568_vm1, %v567_v37 }
 0x2fe   : > { %v628_v54 = vpop.xlane.xlu1 %627 }
 0x2ff   : > { %660 = vst.msk [vmem:[%s2216_s8 + $0x38] sm:$0xff] %vm568_vm1, %v628_v54 }
 0x302   : > { %v652_v38 = vpop.xlane.xlu1 %651 }
 0x303   : > { %668 = vst.msk [vmem:[%s2216_s8 + $0x78] sm:$0xff] %vm568_vm1, %v652_v38 }
 0x306   : > { %v958_v2 = vpop.permute.xlu1 %957 }
 0x307   : > { %v1011_v58 = vsel %vm289_vm0, %v958_v2, 0.0 }
 0x308   : > { %1012 = vadd.xlane.f32.xlu0 %v1011_v58 }
 0x30c   : > { %1036 = vadd.xlane.f32.xlu0 %v1035_v63 }
 0x337   : > { %v869_v55 = vpop.xlane.xlu1 %868 }
 0x338   : > { %1715 = vst.msk [vmem:[%s2195_s7 + $0xc8] sm:$0xff] %vm568_vm1, %v869_v55 }
 0x33b   : > { %v998_v6 = vpop.xlane.xlu1 %997 }
 0x33c   : > { %1723 = vst.msk [vmem:[%s2216_s8 + $0x88] sm:$0xff] %vm568_vm1, %v998_v6  ;;  %v1007_v9 = vpop.xlane.xlu0 %1006 }
 0x33d   : > { %1726 = vst.msk [vmem:[%s2216_s8 + $0xa0] sm:$0xff] %vm568_vm1, %v1007_v9 }
 0x33f   : > { %v1022_v56 = vpop.xlane.xlu1 %1021 }
 0x340   : > { %1731 = vst.msk [vmem:[%s2216_s8 + $0xc8] sm:$0xff] %vm568_vm1, %v1022_v56  ;;  %v1031_v8 = vpop.xlane.xlu0 %1030 }
 0x341   : > { %1734 = vst.msk [vmem:[%s2216_s8 + $0xe0] sm:$0xff] %vm568_vm1, %v1031_v8 }
 0x343   : > { %v875_v43 = vpop.xlane.xlu1 %874 }
 0x344   : > { %1717 = vst.msk [vmem:[%s2195_s7 + $0xd8] sm:$0xff] %vm568_vm1, %v875_v43  ;;  %v860_v46 = vpop.xlane.xlu0 %859 }
 0x345   : > { %1712 = vst.msk [vmem:[%s2195_s7 + $0xb0] sm:$0xff] %vm568_vm1, %v860_v46 }
 0x347   : > { %v1004_v10 = vpop.xlane.xlu1 %1003 }
 0x348   : > { %1725 = vst.msk [vmem:[%s2216_s8 + $0x98] sm:$0xff] %vm568_vm1, %v1004_v10  ;;  %v884_v11 = vpop.xlane.xlu0 %883 }
 0x349   : > { %1720 = vst.msk [vmem:[%s2195_s7 + $0xf0] sm:$0xff] %vm568_vm1, %v884_v11 }
 0x34b   : > { %v1028_v4 = vpop.xlane.xlu1 %1027 }
 0x34c   : > { %1733 = vst.msk [vmem:[%s2216_s8 + $0xd8] sm:$0xff] %vm568_vm1, %v1028_v4 }
 0x34f   : > { %v848_v5 = vpop.xlane.xlu1 %847 }
 0x350   : > { %1708 = vst.msk [vmem:[%s2195_s7 + $0x90] sm:$0xff] %vm568_vm1, %v848_v5 }
 0x353   : > { %v857_v47 = vpop.xlane.xlu1 %856 }
 0x354   : > { %1711 = vst.msk [vmem:[%s2195_s7 + $0xa8] sm:$0xff] %vm568_vm1, %v857_v47 }
 0x357   : > { %v881_v13 = vpop.xlane.xlu1 %880 }
 0x358   : > { %1719 = vst.msk [vmem:[%s2195_s7 + $0xe8] sm:$0xff] %vm568_vm1, %v881_v13 }
 0x35b   : > { %v1010_v60 = vpop.xlane.xlu1 %1009 }
 0x35c   : > { %1727 = vst.msk [vmem:[%s2216_s8 + $0xa8] sm:$0xff] %vm568_vm1, %v1010_v60 }
 0x35f   : > { %v1034_v61 = vpop.xlane.xlu1 %1033 }
 0x360   : > { %1735 = vst.msk [vmem:[%s2216_s8 + $0xe8] sm:$0xff] %vm568_vm1, %v1034_v61 }
 0x363   : > { %v863_v14 = vpop.xlane.xlu1 %862 }
 0x364   : > { %1713 = vst.msk [vmem:[%s2195_s7 + $0xb8] sm:$0xff] %vm568_vm1, %v863_v14 }
 0x367   : > { %v887_v16 = vpop.xlane.xlu1 %886 }
 0x368   : > { %1721 = vst.msk [vmem:[%s2195_s7 + $0xf8] sm:$0xff] %vm568_vm1, %v887_v16 }
 0x36b   : > { %v1016_v42 = vpop.xlane.xlu1 %1015 }
 0x36c   : > { %1729 = vst.msk [vmem:[%s2216_s8 + $0xb8] sm:$0xff] %vm568_vm1, %v1016_v42 }
 0x36f   : > { %v1040_v18 = vpop.xlane.xlu1 %1039 }
 0x370   : > { %1737 = vst.msk [vmem:[%s2216_s8 + $0xf8] sm:$0xff] %vm568_vm1, %v1040_v18 }
 0x394   : > { %1072 = sbr.rel (!%p1916_p4) target bundleno = 923 (0x39b), region = 40 }
 0x395   : > { %v1013_v19 = vpop.xlane.xlu0 %1012 }
 0x396   : > { %1728 = vst.msk [vmem:[%s2216_s8 + $0xb0] sm:$0xff] %vm568_vm1, %v1013_v19 }
 0x399   : > { %v1037_v0 = vpop.xlane.xlu0 %1036 }
 0x39a   : > { %1736 = vst.msk [vmem:[%s2216_s8 + $0xf0] sm:$0xff] %vm568_vm1, %v1037_v0 }
 0x39b PF: > { %1234 = sbr.rel (!%p1916_p4) target bundleno = 941 (0x3ad), region = 78  ;;  %s1750_s13 = sshll.u32 (%p1916_p4), %s1904_s24, 7  ;;  %v1327_v45 = vld [vmem:[%s2195_s7] sm:$0xff] (%p1916_p4)  ;;  %v1329_v48 = vld [vmem:[%s2195_s7 + $0x8] sm:$0xff] (%p1916_p4)  ;;  %v1331_v49 = vld [vmem:[%s2195_s7 + $0x10] sm:$0xff] (%p1916_p4) }
 0x39c   : > { %s2627_s16 = scalar_lea.vmem (%p1916_p4), %s2777_s5, %s1750_s13  ;;  %v1333_v50 = vld [vmem:[%s2195_s7 + $0x18] sm:$0xff] (%p1916_p4)  ;;  %v1335_v53 = vld [vmem:[%s2195_s7 + $0x20] sm:$0xff] (%p1916_p4)  ;;  %v1337_v37 = vld [vmem:[%s2195_s7 + $0x28] sm:$0xff] (%p1916_p4) }
 0x39d   : > { %1328 = vst [vmem:[%s2627_s16] sm:$0xff] (%p1916_p4), %v1327_v45  ;;  %1330 = vst [vmem:[%s2627_s16 + $0x8] sm:$0xff] (%p1916_p4), %v1329_v48  ;;  %v1339_v54 = vld [vmem:[%s2195_s7 + $0x30] sm:$0xff] (%p1916_p4)  ;;  %v1341_v38 = vld [vmem:[%s2195_s7 + $0x38] sm:$0xff] (%p1916_p4) }
 0x39e   : > { %1332 = vst [vmem:[%s2627_s16 + $0x10] sm:$0xff] (%p1916_p4), %v1331_v49  ;;  %1334 = vst [vmem:[%s2627_s16 + $0x18] sm:$0xff] (%p1916_p4), %v1333_v50  ;;  %v1343_v2 = vld [vmem:[%s2195_s7 + $0x40] sm:$0xff] (%p1916_p4)  ;;  %v1345_v58 = vld [vmem:[%s2195_s7 + $0x48] sm:$0xff] (%p1916_p4) }
 0x39f   : > { %1336 = vst [vmem:[%s2627_s16 + $0x20] sm:$0xff] (%p1916_p4), %v1335_v53  ;;  %1338 = vst [vmem:[%s2627_s16 + $0x28] sm:$0xff] (%p1916_p4), %v1337_v37  ;;  %v1347_v63 = vld [vmem:[%s2195_s7 + $0x50] sm:$0xff] (%p1916_p4)  ;;  %v1349_v55 = vld [vmem:[%s2195_s7 + $0x58] sm:$0xff] (%p1916_p4) }
 0x3a0   : > { %1340 = vst [vmem:[%s2627_s16 + $0x30] sm:$0xff] (%p1916_p4), %v1339_v54  ;;  %1342 = vst [vmem:[%s2627_s16 + $0x38] sm:$0xff] (%p1916_p4), %v1341_v38  ;;  %v1351_v6 = vld [vmem:[%s2195_s7 + $0x60] sm:$0xff] (%p1916_p4)  ;;  %v1353_v9 = vld [vmem:[%s2195_s7 + $0x68] sm:$0xff] (%p1916_p4) }
 0x3a1   : > { %1344 = vst [vmem:[%s2627_s16 + $0x40] sm:$0xff] (%p1916_p4), %v1343_v2  ;;  %1346 = vst [vmem:[%s2627_s16 + $0x48] sm:$0xff] (%p1916_p4), %v1345_v58  ;;  %v1355_v56 = vld [vmem:[%s2195_s7 + $0x70] sm:$0xff] (%p1916_p4)  ;;  %v1357_v8 = vld [vmem:[%s2195_s7 + $0x78] sm:$0xff] (%p1916_p4) }
 0x3a2   : > { %1348 = vst [vmem:[%s2627_s16 + $0x50] sm:$0xff] %v1347_v63  ;;  %1350 = vst [vmem:[%s2627_s16 + $0x58] sm:$0xff] %v1349_v55  ;;  %v1359_v43 = vld [vmem:[%s2195_s7 + $0x80] sm:$0xff]  ;;  %v1361_v46 = vld [vmem:[%s2195_s7 + $0x88] sm:$0xff] }
 0x3a3   : > { %1352 = vst [vmem:[%s2627_s16 + $0x60] sm:$0xff] %v1351_v6  ;;  %1354 = vst [vmem:[%s2627_s16 + $0x68] sm:$0xff] %v1353_v9  ;;  %v1363_v10 = vld [vmem:[%s2195_s7 + $0x90] sm:$0xff]  ;;  %v1365_v11 = vld [vmem:[%s2195_s7 + $0x98] sm:$0xff] }
 0x3a4   : > { %1356 = vst [vmem:[%s2627_s16 + $0x70] sm:$0xff] %v1355_v56  ;;  %1358 = vst [vmem:[%s2627_s16 + $0x78] sm:$0xff] %v1357_v8  ;;  %v1367_v4 = vld [vmem:[%s2195_s7 + $0xa0] sm:$0xff]  ;;  %v1369_v5 = vld [vmem:[%s2195_s7 + $0xa8] sm:$0xff] }
 0x3a5   : > { %1360 = vst [vmem:[%s2627_s16 + $0x100] sm:$0xff] %v1359_v43  ;;  %1362 = vst [vmem:[%s2627_s16 + $0x108] sm:$0xff] %v1361_v46  ;;  %v1371_v47 = vld [vmem:[%s2195_s7 + $0xb0] sm:$0xff]  ;;  %v1373_v13 = vld [vmem:[%s2195_s7 + $0xb8] sm:$0xff] }
 0x3a6   : > { %1364 = vst [vmem:[%s2627_s16 + $0x110] sm:$0xff] %v1363_v10  ;;  %1366 = vst [vmem:[%s2627_s16 + $0x118] sm:$0xff] %v1365_v11  ;;  %v1375_v60 = vld [vmem:[%s2195_s7 + $0xc0] sm:$0xff]  ;;  %v1377_v61 = vld [vmem:[%s2195_s7 + $0xc8] sm:$0xff] }
 0x3a7   : > { %1368 = vst [vmem:[%s2627_s16 + $0x120] sm:$0xff] %v1367_v4  ;;  %1370 = vst [vmem:[%s2627_s16 + $0x128] sm:$0xff] %v1369_v5  ;;  %v1379_v14 = vld [vmem:[%s2195_s7 + $0xd0] sm:$0xff]  ;;  %v1381_v16 = vld [vmem:[%s2195_s7 + $0xd8] sm:$0xff] }
 0x3a8   : > { %1372 = vst [vmem:[%s2627_s16 + $0x130] sm:$0xff] %v1371_v47  ;;  %1374 = vst [vmem:[%s2627_s16 + $0x138] sm:$0xff] %v1373_v13  ;;  %v1383_v42 = vld [vmem:[%s2195_s7 + $0xe0] sm:$0xff]  ;;  %v1385_v18 = vld [vmem:[%s2195_s7 + $0xe8] sm:$0xff] }
 0x3a9   : > { %1376 = vst [vmem:[%s2627_s16 + $0x140] sm:$0xff] %v1375_v60  ;;  %1378 = vst [vmem:[%s2627_s16 + $0x148] sm:$0xff] %v1377_v61  ;;  %v1387_v19 = vld [vmem:[%s2195_s7 + $0xf0] sm:$0xff]  ;;  %v1389_v0 = vld [vmem:[%s2195_s7 + $0xf8] sm:$0xff] }
 0x3aa   : > { %1380 = vst [vmem:[%s2627_s16 + $0x150] sm:$0xff] %v1379_v14  ;;  %1382 = vst [vmem:[%s2627_s16 + $0x158] sm:$0xff] %v1381_v16 }
 0x3ab   : > { %1384 = vst [vmem:[%s2627_s16 + $0x160] sm:$0xff] %v1383_v42  ;;  %1386 = vst [vmem:[%s2627_s16 + $0x168] sm:$0xff] %v1385_v18 }
 0x3ac   : > { %1388 = vst [vmem:[%s2627_s16 + $0x170] sm:$0xff] %v1387_v19  ;;  %1390 = vst [vmem:[%s2627_s16 + $0x178] sm:$0xff] %v1389_v0 }
 0x3ad PF: > { %1396 = sbr.rel (!%p1916_p4) target bundleno = 959 (0x3bf), region = 116  ;;  %s1751_s17 = sshll.u32 (%p1916_p4), %s1904_s24, 7  ;;  %v1489_v51 = vld [vmem:[%s2216_s8] sm:$0xff] (%p1916_p4)  ;;  %v1491_v20 = vld [vmem:[%s2216_s8 + $0x8] sm:$0xff] (%p1916_p4)  ;;  %v1493_v1 = vld [vmem:[%s2216_s8 + $0x10] sm:$0xff] (%p1916_p4) }
 0x3ae   : > { %s2699_s20 = scalar_lea.vmem (%p1916_p4), %s2778_s6, %s1751_s17  ;;  %v1495_v21 = vld [vmem:[%s2216_s8 + $0x18] sm:$0xff] (%p1916_p4)  ;;  %v1497_v3 = vld [vmem:[%s2216_s8 + $0x20] sm:$0xff] (%p1916_p4)  ;;  %v1499_v52 = vld [vmem:[%s2216_s8 + $0x28] sm:$0xff] (%p1916_p4) }
 0x3af   : > { %1490 = vst [vmem:[%s2699_s20] sm:$0xff] (%p1916_p4), %v1489_v51  ;;  %1492 = vst [vmem:[%s2699_s20 + $0x8] sm:$0xff] (%p1916_p4), %v1491_v20  ;;  %v1501_v22 = vld [vmem:[%s2216_s8 + $0x30] sm:$0xff] (%p1916_p4)  ;;  %v1503_v35 = vld [vmem:[%s2216_s8 + $0x38] sm:$0xff] (%p1916_p4) }
 0x3b0   : > { %1494 = vst [vmem:[%s2699_s20 + $0x10] sm:$0xff] (%p1916_p4), %v1493_v1  ;;  %1496 = vst [vmem:[%s2699_s20 + $0x18] sm:$0xff] (%p1916_p4), %v1495_v21  ;;  %v1505_v23 = vld [vmem:[%s2216_s8 + $0x40] sm:$0xff] (%p1916_p4)  ;;  %v1507_v24 = vld [vmem:[%s2216_s8 + $0x48] sm:$0xff] (%p1916_p4) }
 0x3b1   : > { %1498 = vst [vmem:[%s2699_s20 + $0x20] sm:$0xff] (%p1916_p4), %v1497_v3  ;;  %1500 = vst [vmem:[%s2699_s20 + $0x28] sm:$0xff] (%p1916_p4), %v1499_v52  ;;  %v1509_v39 = vld [vmem:[%s2216_s8 + $0x50] sm:$0xff] (%p1916_p4)  ;;  %v1511_v25 = vld [vmem:[%s2216_s8 + $0x58] sm:$0xff] (%p1916_p4) }
 0x3b2   : > { %1502 = vst [vmem:[%s2699_s20 + $0x30] sm:$0xff] (%p1916_p4), %v1501_v22  ;;  %1504 = vst [vmem:[%s2699_s20 + $0x38] sm:$0xff] (%p1916_p4), %v1503_v35  ;;  %v1513_v62 = vld [vmem:[%s2216_s8 + $0x60] sm:$0xff] (%p1916_p4)  ;;  %v1515_v26 = vld [vmem:[%s2216_s8 + $0x68] sm:$0xff] (%p1916_p4) }
 0x3b3   : > { %1506 = vst [vmem:[%s2699_s20 + $0x40] sm:$0xff] (%p1916_p4), %v1505_v23  ;;  %1508 = vst [vmem:[%s2699_s20 + $0x48] sm:$0xff] (%p1916_p4), %v1507_v24  ;;  %v1517_v44 = vld [vmem:[%s2216_s8 + $0x70] sm:$0xff] (%p1916_p4)  ;;  %v1519_v41 = vld [vmem:[%s2216_s8 + $0x78] sm:$0xff] (%p1916_p4) }
 0x3b4   : > { %1510 = vst [vmem:[%s2699_s20 + $0x50] sm:$0xff] %v1509_v39  ;;  %1512 = vst [vmem:[%s2699_s20 + $0x58] sm:$0xff] %v1511_v25  ;;  %v1521_v59 = vld [vmem:[%s2216_s8 + $0x80] sm:$0xff]  ;;  %v1523_v27 = vld [vmem:[%s2216_s8 + $0x88] sm:$0xff] }
 0x3b5   : > { %1514 = vst [vmem:[%s2699_s20 + $0x60] sm:$0xff] %v1513_v62  ;;  %1516 = vst [vmem:[%s2699_s20 + $0x68] sm:$0xff] %v1515_v26  ;;  %v1525_v57 = vld [vmem:[%s2216_s8 + $0x90] sm:$0xff]  ;;  %v1527_v28 = vld [vmem:[%s2216_s8 + $0x98] sm:$0xff] }
 0x3b6   : > { %1518 = vst [vmem:[%s2699_s20 + $0x70] sm:$0xff] %v1517_v44  ;;  %1520 = vst [vmem:[%s2699_s20 + $0x78] sm:$0xff] %v1519_v41  ;;  %v1529_v29 = vld [vmem:[%s2216_s8 + $0xa0] sm:$0xff]  ;;  %v1531_v15 = vld [vmem:[%s2216_s8 + $0xa8] sm:$0xff] }
 0x3b7   : > { %1522 = vst [vmem:[%s2699_s20 + $0x100] sm:$0xff] %v1521_v59  ;;  %1524 = vst [vmem:[%s2699_s20 + $0x108] sm:$0xff] %v1523_v27  ;;  %v1533_v30 = vld [vmem:[%s2216_s8 + $0xb0] sm:$0xff]  ;;  %v1535_v17 = vld [vmem:[%s2216_s8 + $0xb8] sm:$0xff] }
 0x3b8   : > { %1526 = vst [vmem:[%s2699_s20 + $0x110] sm:$0xff] %v1525_v57  ;;  %1528 = vst [vmem:[%s2699_s20 + $0x118] sm:$0xff] %v1527_v28  ;;  %v1537_v31 = vld [vmem:[%s2216_s8 + $0xc0] sm:$0xff]  ;;  %v1539_v7 = vld [vmem:[%s2216_s8 + $0xc8] sm:$0xff] }
 0x3b9   : > { %1530 = vst [vmem:[%s2699_s20 + $0x120] sm:$0xff] %v1529_v29  ;;  %1532 = vst [vmem:[%s2699_s20 + $0x128] sm:$0xff] %v1531_v15  ;;  %v1541_v32 = vld [vmem:[%s2216_s8 + $0xd0] sm:$0xff]  ;;  %v1543_v12 = vld [vmem:[%s2216_s8 + $0xd8] sm:$0xff] }
 0x3ba   : > { %1534 = vst [vmem:[%s2699_s20 + $0x130] sm:$0xff] %v1533_v30  ;;  %1536 = vst [vmem:[%s2699_s20 + $0x138] sm:$0xff] %v1535_v17  ;;  %v1545_v33 = vld [vmem:[%s2216_s8 + $0xe0] sm:$0xff]  ;;  %v1547_v34 = vld [vmem:[%s2216_s8 + $0xe8] sm:$0xff] }
 0x3bb   : > { %1538 = vst [vmem:[%s2699_s20 + $0x140] sm:$0xff] %v1537_v31  ;;  %1540 = vst [vmem:[%s2699_s20 + $0x148] sm:$0xff] %v1539_v7  ;;  %v1549_v36 = vld [vmem:[%s2216_s8 + $0xf0] sm:$0xff]  ;;  %v1551_v40 = vld [vmem:[%s2216_s8 + $0xf8] sm:$0xff] }
 0x3bc   : > { %1542 = vst [vmem:[%s2699_s20 + $0x150] sm:$0xff] %v1541_v32  ;;  %1544 = vst [vmem:[%s2699_s20 + $0x158] sm:$0xff] %v1543_v12 }
 0x3bd   : > { %1546 = vst [vmem:[%s2699_s20 + $0x160] sm:$0xff] %v1545_v33  ;;  %1548 = vst [vmem:[%s2699_s20 + $0x168] sm:$0xff] %v1547_v34 }
 0x3be   : > { %1550 = vst [vmem:[%s2699_s20 + $0x170] sm:$0xff] %v1549_v36  ;;  %1552 = vst [vmem:[%s2699_s20 + $0x178] sm:$0xff] %v1551_v40 }
 0x3bf PF: > { %p14_p8 = scmp.ge.s32.totalorder %s1906_s25, 4   ;;  %s2780_s21 = smov %s1848_s22 }
 0x3c0   : > { %s2781_s22 = smov %s1914_s28  ;;  %s2782_s23 = smov %s1906_s25 }
 0x3c1   :  { %16 = sbr.rel (!%p14_p8) target bundleno = 2 (0x2), region = 208 }

</bundles_post_ra>
